<compile_context>
chip_gen: v7x
topology: tpu7x:2x2x1
jax: 0.10.0
libtpu: 0.0.40
codegen_flags: <defaults>
</compile_context>

<pallas_src>
import functools

import jax
import jax.numpy as jnp
from jax import lax
from jax.experimental import pallas as pl
from jax.experimental.pallas import tpu as pltpu


def _round_up(x, m):
    return (x + m - 1) // m * m


# ---------------------------------------------------------------------------
# Kernel 1 (layer 1 + hidden->out projection), grid = (row tiles, A-col tiles):
#   acc += A[i,k] @ X[k]                (reassociated: contraction runs at width in_feature)
#   at k == last:  HW2[i] = relu(acc @ W1 + b1) @ W2
# ---------------------------------------------------------------------------
def layer1_kernel(a_ref, x_ref, w1_ref, b1_ref, w2_ref, o_ref, acc_ref):
    k = pl.program_id(1)

    @pl.when(k == 0)
    def _():
        acc_ref[...] = jnp.zeros_like(acc_ref)

    acc_ref[...] += jnp.dot(a_ref[...], x_ref[...],
                            preferred_element_type=jnp.float32)        # (tm, in_f) f32

    @pl.when(k == pl.num_programs(1) - 1)
    def _():
        ax = acc_ref[...]                                              # (tm, in_f) f32
        h = jnp.dot(ax.astype(jnp.bfloat16), w1_ref[...],
                    preferred_element_type=jnp.float32)                # (tm, hid) f32
        h = jnp.maximum(h + b1_ref[...], 0.0)                          # bias + ReLU (f32)
        # F.dropout(..., training=self.training): identity in inference.
        # TODO(synk): training-mode dropout (pltpu.prng_random_bits mask) not emitted.
        hw2 = jnp.dot(h.astype(jnp.bfloat16), w2_ref[...],
                      preferred_element_type=jnp.float32)              # (tm, out_pad) f32
        o_ref[...] = hw2.astype(o_ref.dtype)


# ---------------------------------------------------------------------------
# Kernel 2 (layer 2 aggregation + masked softmax), grid = (row tiles, A-col tiles):
#   acc += A[i,k] @ HW2[k]
#   at k == last:  out[i] = softmax(acc + b2) over the first `out_f` feature lanes
# ---------------------------------------------------------------------------
def layer2_kernel(a_ref, hw2_ref, b2_ref, o_ref, acc_ref, *, out_f):
    k = pl.program_id(1)

    @pl.when(k == 0)
    def _():
        acc_ref[...] = jnp.zeros_like(acc_ref)

    acc_ref[...] += jnp.dot(a_ref[...], hw2_ref[...],
                            preferred_element_type=jnp.float32)        # (tm, out_pad) f32

    @pl.when(k == pl.num_programs(1) - 1)
    def _():
        z = acc_ref[...] + b2_ref[...]                                 # (tm, out_pad) f32
        lane = lax.broadcasted_iota(jnp.int32, z.shape, dimension=1)
        z = jnp.where(lane < out_f, z, -jnp.inf)                       # mask padded lanes
        z = z - jnp.max(z, axis=1, keepdims=True)
        e = jnp.exp(z)
        denom = jnp.sum(e, axis=1, keepdims=True)
        o_ref[...] = e * pl.reciprocal(denom, approx=True)


# ---------------------------------------------------------------------------
# Wrapper: pad to lane/row-dense shapes, tile, run the two pallas_calls.
# ---------------------------------------------------------------------------
def gcn_forward(a_hat, x, w1, b1, w2, b2, *, tile=128):
    n, in_f = x.shape
    hid = w1.shape[1]
    out_f = w2.shape[1]

    n_pad = _round_up(max(n, tile), tile)
    out_pad = _round_up(max(out_f, 128), 128)

    f32, bf16 = jnp.float32, jnp.bfloat16

    # Zero-padded operands (padded A rows/cols are zero so real rows are unaffected;
    # padded output rows are sliced off at the end).
    a_p = jnp.zeros((n_pad, n_pad), bf16).at[:n, :n].set(a_hat.astype(bf16))
    x_p = jnp.zeros((n_pad, in_f), bf16).at[:n, :].set(x.astype(bf16))
    w1_b = w1.astype(bf16)
    b1_f = b1.reshape(1, hid).astype(f32)
    w2_p = jnp.zeros((hid, out_pad), bf16).at[:, :out_f].set(w2.astype(bf16))
    b2_p = jnp.zeros((1, out_pad), f32).at[:, :out_f].set(b2.reshape(1, out_f).astype(f32))

    grid = (n_pad // tile, n_pad // tile)
    cparams = pltpu.CompilerParams(
        dimension_semantics=("parallel", "arbitrary"),
        vmem_limit_bytes=64 * 1024 * 1024,   # v7x-safe budget
    )

    # ---- layer 1 (+ projection to out features) ----
    hw2 = pl.pallas_call(
        layer1_kernel,
        out_shape=jax.ShapeDtypeStruct((n_pad, out_pad), bf16),
        grid_spec=pltpu.PrefetchScalarGridSpec(
            num_scalar_prefetch=0,
            grid=grid,
            in_specs=[
                pl.BlockSpec((tile, tile), lambda i, k: (i, k)),        # A_hat tile
                pl.BlockSpec((tile, in_f), lambda i, k: (k, 0)),        # X tile
                pl.BlockSpec((in_f, hid), lambda i, k: (0, 0)),         # W1 (resident)
                pl.BlockSpec((1, hid), lambda i, k: (0, 0)),            # b1
                pl.BlockSpec((hid, out_pad), lambda i, k: (0, 0)),      # W2 (resident)
            ],
            out_specs=pl.BlockSpec((tile, out_pad), lambda i, k: (i, 0)),
            scratch_shapes=[pltpu.VMEM((tile, in_f), f32)],
        ),
        compiler_params=cparams,
        cost_estimate=pl.CostEstimate(
            flops=2 * n_pad * n_pad * in_f
                  + 2 * n_pad * in_f * hid
                  + 2 * n_pad * hid * out_pad,
            transcendentals=0,
            bytes_accessed=a_p.size * 2 + x_p.size * 2 + w1_b.size * 2
                           + w2_p.size * 2 + n_pad * out_pad * 2,
        ),
    )(a_p, x_p, w1_b, b1_f, w2_p)

    # ---- layer 2 aggregation + softmax over features ----
    out_p = pl.pallas_call(
        functools.partial(layer2_kernel, out_f=out_f),
        out_shape=jax.ShapeDtypeStruct((n_pad, out_pad), f32),
        grid_spec=pltpu.PrefetchScalarGridSpec(
            num_scalar_prefetch=0,
            grid=grid,
            in_specs=[
                pl.BlockSpec((tile, tile), lambda i, k: (i, k)),        # A_hat tile
                pl.BlockSpec((tile, out_pad), lambda i, k: (k, 0)),     # HW2 tile
                pl.BlockSpec((1, out_pad), lambda i, k: (0, 0)),        # b2
            ],
            out_specs=pl.BlockSpec((tile, out_pad), lambda i, k: (i, 0)),
            scratch_shapes=[pltpu.VMEM((tile, out_pad), f32)],
        ),
        compiler_params=cparams,
        cost_estimate=pl.CostEstimate(
            flops=2 * n_pad * n_pad * out_pad,
            transcendentals=n_pad * out_pad,
            bytes_accessed=a_p.size * 2 + n_pad * out_pad * 2 + n_pad * out_pad * 4,
        ),
    )(a_p, hw2, b2_p)

    return out_p[:n, :out_f]


# ---------------------------------------------------------------------------
# Glue: dense symmetrically-normalized adjacency (PyG gcn_norm), plain JAX.
# TODO(synk): for large graphs stream A_hat row-tiles from HBM / use blocked-sparse
#             instead of materializing the dense N x N matrix.
# ---------------------------------------------------------------------------
def build_normalized_adjacency(edge_index, edge_weight, num_nodes):
    loop = jnp.arange(num_nodes, dtype=edge_index.dtype)
    row = jnp.concatenate([edge_index[0], loop])
    col = jnp.concatenate([edge_index[1], loop])
    w = jnp.concatenate([edge_weight,
                         jnp.ones((num_nodes,), dtype=edge_weight.dtype)])
    deg = jnp.zeros((num_nodes,), dtype=jnp.float32).at[col].add(w)
    deg_inv_sqrt = jnp.where(deg > 0, 1.0 / jnp.sqrt(deg), 0.0)
    norm = deg_inv_sqrt[row] * w * deg_inv_sqrt[col]
    a_hat = jnp.zeros((num_nodes, num_nodes), dtype=jnp.float32)
    a_hat = a_hat.at[col, row].add(norm)
    return a_hat


def init_params(key, in_feature, hidden, out_feature):
    k1, k2 = jax.random.split(key)
    s1 = jnp.sqrt(6.0 / (in_feature + hidden))   # glorot-uniform (PyG default)
    s2 = jnp.sqrt(6.0 / (hidden + out_feature))
    w1 = jax.random.uniform(k1, (in_feature, hidden), jnp.float32, -s1, s1)
    w2 = jax.random.uniform(k2, (hidden, out_feature), jnp.float32, -s2, s2)
    b1 = jnp.zeros((1, hidden), jnp.float32)
    b2 = jnp.zeros((1, out_feature), jnp.float32)
    return w1, b1, w2, b2


def gcn_reference(a_hat, x, w1, b1, w2, b2):
    h = jnp.maximum(a_hat @ (x @ w1) + b1, 0.0)
    z = a_hat @ (h @ w2) + b2
    z = z - jnp.max(z, axis=1, keepdims=True)
    e = jnp.exp(z)
    return e / jnp.sum(e, axis=1, keepdims=True)


if __name__ == "__main__":
    # small graph: 8 nodes, in_feature=16, hidden=1024 (fixed by module), out_feature=8
    N, IN_F, HID, OUT_F = 8, 16, 1024, 8

    key = jax.random.PRNGKey(0)
    kx, ke, kp = jax.random.split(key, 3)

    x = jax.random.normal(kx, (N, IN_F), jnp.float32)

    src = jnp.array([0, 1, 2, 3, 4, 5, 6, 7, 0, 2, 4, 6], dtype=jnp.int32)
    dst = jnp.array([1, 2, 3, 4, 5, 6, 7, 0, 3, 5, 7, 1], dtype=jnp.int32)
    edge_index = jnp.stack([src, dst])                          # (2, E)
    edge_weight = jax.random.uniform(ke, (src.shape[0],), jnp.float32, 0.1, 1.0)

    a_hat = build_normalized_adjacency(edge_index, edge_weight, N)
    w1, b1, w2, b2 = init_params(kp, IN_F, HID, OUT_F)

    out = gcn_forward(a_hat, x, w1, b1, w2, b2)
    out = jax.block_until_ready(out)

    ref = gcn_reference(a_hat, x, w1, b1, w2, b2)

    assert out.shape == (N, OUT_F)
    # softmax rows sum to 1 (approx reciprocal -> ~1e-4 tolerance)
    assert bool(jnp.allclose(jnp.sum(out, axis=1), 1.0, atol=5e-3))
    # matches pure-JAX f32 reference within bf16 matmul tolerance
    assert bool(jnp.allclose(out, ref, atol=2e-2, rtol=2e-2))
    print("KERNEL_OK")
</pallas_src>

<mosaic_0001>
module attributes {stable_mosaic.version = 11 : i64} {
  func.func @layer1_kernel(%arg0: i32, %arg1: i32, %arg2: memref<128x128xbf16, #tpu.memory_space<vmem>>, %arg3: memref<128x16xbf16, #tpu.memory_space<vmem>>, %arg4: memref<16x1024xbf16, #tpu.memory_space<vmem>>, %arg5: memref<1x1024xf32, #tpu.memory_space<vmem>>, %arg6: memref<1024x128xbf16, #tpu.memory_space<vmem>>, %arg7: memref<128x128xbf16, #tpu.memory_space<vmem>>, %arg8: memref<128x16xf32, #tpu.memory_space<vmem>>) attributes {dimension_semantics = [#tpu.dimension_semantics<parallel>, #tpu.dimension_semantics<arbitrary>], iteration_bounds = array<i64: 1, 1>, scalar_prefetch = 0 : i64, scratch_operands = 1 : i64, tpu.core_type = #tpu.core_type<tc>, window_params = [{transform_indices = @transform_0, window_bounds = array<i64: 128, 128>}, {transform_indices = @transform_1, window_bounds = array<i64: 128, 16>}, {pipeline_mode = #tpu.pipeline_mode<synchronous>, transform_indices = @transform_2, window_bounds = array<i64: 16, 1024>}, {pipeline_mode = #tpu.pipeline_mode<synchronous>, transform_indices = @transform_3, window_bounds = array<i64: 1, 1024>}, {pipeline_mode = #tpu.pipeline_mode<synchronous>, transform_indices = @transform_4, window_bounds = array<i64: 1024, 128>}, {transform_indices = @transform_5, window_bounds = array<i64: 128, 128>}]} {
    %c0_i32 = arith.constant 0 : i32
    %0 = arith.cmpi eq, %arg1, %c0_i32 : i32
    %1 = arith.extui %0 : i1 to i32
    %c0_i32_0 = arith.constant 0 : i32
    %2 = arith.cmpi ne, %1, %c0_i32_0 : i32
    scf.if %2 {
      %cst_10 = arith.constant 0.000000e+00 : f32
      %12 = vector.broadcast %cst_10 : f32 to vector<128x16xf32>
      %c0_11 = arith.constant 0 : index
      %c0_12 = arith.constant 0 : index
      %13 = vector.load %arg8[%c0_11, %c0_12] : memref<128x16xf32, #tpu.memory_space<vmem>>, vector<128x16xf32>
      tpu.vector_store %arg8[%c0_11, %c0_12], %12 {strides = array<i32>} : memref<128x16xf32, #tpu.memory_space<vmem>>, vector<128x16xf32>,
    } else {
    }
    %c0 = arith.constant 0 : index
    %c0_1 = arith.constant 0 : index
    %3 = vector.load %arg8[%c0, %c0_1] : memref<128x16xf32, #tpu.memory_space<vmem>>, vector<128x16xf32>
    %c0_2 = arith.constant 0 : index
    %c0_3 = arith.constant 0 : index
    %4 = vector.load %arg2[%c0_2, %c0_3] : memref<128x128xbf16, #tpu.memory_space<vmem>>, vector<128x128xbf16>
    %c0_4 = arith.constant 0 : index
    %c0_5 = arith.constant 0 : index
    %5 = vector.load %arg3[%c0_4, %c0_5] : memref<128x16xbf16, #tpu.memory_space<vmem>>, vector<128x16xbf16>
    %cst = arith.constant dense<0.000000e+00> : vector<128x16xf32>
    %6 = tpu.matmul %4, %5, %cst {dimension_numbers = #tpu.dot_dimension_numbers<[1], [0], [0], [1], [0, 0, 1, 1], [], []>} : vector<128x128xbf16>, vector<128x16xbf16>, vector<128x16xf32> -> vector<128x16xf32>
    %7 = arith.addf %3, %6 : vector<128x16xf32>
    %c0_6 = arith.constant 0 : index
    %c0_7 = arith.constant 0 : index
    %8 = vector.load %arg8[%c0_6, %c0_7] : memref<128x16xf32, #tpu.memory_space<vmem>>, vector<128x16xf32>
    tpu.vector_store %arg8[%c0_6, %c0_7], %7 {strides = array<i32>} : memref<128x16xf32, #tpu.memory_space<vmem>>, vector<128x16xf32>,
    %c0_i32_8 = arith.constant 0 : i32
    %9 = arith.cmpi eq, %arg1, %c0_i32_8 : i32
    %10 = arith.extui %9 : i1 to i32
    %c0_i32_9 = arith.constant 0 : i32
    %11 = arith.cmpi ne, %10, %c0_i32_9 : i32
    scf.if %11 {
      %c0_10 = arith.constant 0 : index
      %c0_11 = arith.constant 0 : index
      %12 = vector.load %arg8[%c0_10, %c0_11] : memref<128x16xf32, #tpu.memory_space<vmem>>, vector<128x16xf32>
      %13 = arith.truncf %12 : vector<128x16xf32> to vector<128x16xbf16>
      %c0_12 = arith.constant 0 : index
      %c0_13 = arith.constant 0 : index
      %14 = vector.load %arg4[%c0_12, %c0_13] : memref<16x1024xbf16, #tpu.memory_space<vmem>>, vector<16x1024xbf16>
      %cst_14 = arith.constant dense<0.000000e+00> : vector<128x1024xf32>
      %15 = tpu.matmul %13, %14, %cst_14 {dimension_numbers = #tpu.dot_dimension_numbers<[1], [0], [0], [1], [0, 0, 1, 1], [], []>} : vector<128x16xbf16>, vector<16x1024xbf16>, vector<128x1024xf32> -> vector<128x1024xf32>
      %c0_15 = arith.constant 0 : index
      %c0_16 = arith.constant 0 : index
      %16 = vector.load %arg5[%c0_15, %c0_16] : memref<1x1024xf32, #tpu.memory_space<vmem>>, vector<1x1024xf32>
      %17 = vector.broadcast %16 : vector<1x1024xf32> to vector<128x1024xf32>
      %18 = arith.addf %15, %17 : vector<128x1024xf32>
      %cst_17 = arith.constant 0.000000e+00 : f32
      %19 = vector.broadcast %cst_17 : f32 to vector<128x1024xf32>
      %20 = arith.maximumf %18, %19 : vector<128x1024xf32>
      %21 = arith.truncf %20 : vector<128x1024xf32> to vector<128x1024xbf16>
      %c0_18 = arith.constant 0 : index
      %c0_19 = arith.constant 0 : index
      %22 = vector.load %arg6[%c0_18, %c0_19] : memref<1024x128xbf16, #tpu.memory_space<vmem>>, vector<1024x128xbf16>
      %cst_20 = arith.constant dense<0.000000e+00> : vector<128x128xf32>
      %23 = tpu.matmul %21, %22, %cst_20 {dimension_numbers = #tpu.dot_dimension_numbers<[1], [0], [0], [1], [0, 0, 1, 1], [], []>} : vector<128x1024xbf16>, vector<1024x128xbf16>, vector<128x128xf32> -> vector<128x128xf32>
      %24 = arith.truncf %23 : vector<128x128xf32> to vector<128x128xbf16>
      %c0_21 = arith.constant 0 : index
      %c0_22 = arith.constant 0 : index
      %25 = vector.load %arg7[%c0_21, %c0_22] : memref<128x128xbf16, #tpu.memory_space<vmem>>, vector<128x128xbf16>
      tpu.vector_store %arg7[%c0_21, %c0_22], %24 {strides = array<i32>} : memref<128x128xbf16, #tpu.memory_space<vmem>>, vector<128x128xbf16>,
    } else {
    }
    return
  }
  func.func @transform_0(%arg0: i32, %arg1: i32) -> (i32, i32) {
    %c0_i32 = arith.constant 0 : i32
    return %arg0, %arg1 : i32, i32
  }
  func.func @transform_1(%arg0: i32, %arg1: i32) -> (i32, i32) {
    %c0_i32 = arith.constant 0 : i32
    %c0_i32_0 = arith.constant 0 : i32
    return %arg1, %c0_i32 : i32, i32
  }
  func.func @transform_2(%arg0: i32, %arg1: i32) -> (i32, i32) {
    %c0_i32 = arith.constant 0 : i32
    %c0_i32_0 = arith.constant 0 : i32
    %c0_i32_1 = arith.constant 0 : i32
    return %c0_i32, %c0_i32_0 : i32, i32
  }
  func.func @transform_3(%arg0: i32, %arg1: i32) -> (i32, i32) {
    %c0_i32 = arith.constant 0 : i32
    %c0_i32_0 = arith.constant 0 : i32
    %c0_i32_1 = arith.constant 0 : i32
    return %c0_i32, %c0_i32_0 : i32, i32
  }
  func.func @transform_4(%arg0: i32, %arg1: i32) -> (i32, i32) {
    %c0_i32 = arith.constant 0 : i32
    %c0_i32_0 = arith.constant 0 : i32
    %c0_i32_1 = arith.constant 0 : i32
    return %c0_i32, %c0_i32_0 : i32, i32
  }
  func.func @transform_5(%arg0: i32, %arg1: i32) -> (i32, i32) {
    %c0_i32 = arith.constant 0 : i32
    %c0_i32_0 = arith.constant 0 : i32
    return %arg0, %c0_i32 : i32, i32
  }
}

</mosaic_0001>

<bundles_post_ra>
// kernel: tpu_custom_call.1
= control target key start
LH: loop header
LB: loop body
LE: loop exit
PB: predicated region body
PF: predicated region fallthrough
CT: control target
= control target key end

     0   :  { %10 = vsyncpa [#allocation4], 0  ;;  %s3397_s0 = inlined_call_operand.hbm [shape: bf16[128,128], index: 0, kind: input, shape index: {}]   ;;  %s3398_s1 = inlined_call_operand.hbm [shape: bf16[128,16], index: 1, kind: input, shape index: {}]   ;;  %s3399_s2 = inlined_call_operand.hbm [shape: bf16[16,1024], index: 2, kind: input, shape index: {}]   ;;  %s3400_s3 = inlined_call_operand.hbm [shape: f32[1,1024], index: 3, kind: input, shape index: {}]   ;;  %s3401_s4 = inlined_call_operand.hbm [shape: bf16[1024,128], index: 4, kind: input, shape index: {}]   ;;  %s3402_s5 = inlined_call_operand.hbm [shape: bf16[128,128], index: 5, kind: output, shape index: {}]  }
   0x1   :  { %11 = vsyncpa [#allocation7], 0 }
   0x2   :  { %12 = vsyncpa [#allocation10], 0 }
   0x3   :  { %13 = vsyncpa [#allocation5], 0  ;;  %s2904_s18 = smov [#allocation6]   ;;  %s2905_s20 = smov [#allocation9]  }
   0x4   :  { %s31_s19 = sshll.u32 %s2904_s18, 4  ;;  %s56_s21 = sshll.u32 %s2905_s20, 4  ;;  %s32_s19 = int_to_ptr.vmem [resolvable:$true] %s31_s19  ;;  %s57_s21 = int_to_ptr.vmem [resolvable:$true] %s56_s21 }
   0x5   :  { %s2764_s24 = scalar_lea.hbm %s3398_s1, 1024 }
   0x6   :  { %p2765_p0 = scmp.ne.s32.totalorder %s3398_s1, %s2764_s24  ;;  %p2768_p1 = scmp.lt.u32.totalorder %s2764_s24, %s3398_s1 }
   0x8   :  { %p2770_p2 = pnand %p2768_p1, %p2765_p0 }
   0xa   :  { %2773 = shalt.err (!%p2770_p2)
}
   0xb   :  { %s2774_s29 = scalar_lea.vmem %s32_s19, 1024  ;;  %p2779_p4 = scmp.lt.s32.totalorder %s32_s19, %s32_s19 }
   0xc   :  { %p2775_p3 = scmp.ne.s32.totalorder %s32_s19, %s2774_s29  ;;  %p2780_p5 = scmp.lt.s32.totalorder %s2774_s29, %s2774_s29 }
   0xe   :  { %p2781_p6 = por %p2780_p5, %p2779_p4 }
  0x10   :  { %p2782_p7 = pnand %p2781_p6, %p2775_p3 }
  0x12   :  { %2785 = shalt.err (!%p2782_p7)
}
  0x13   :  { %s2906_s30 = smov 64   ;;  %s2907_s6 = smov 4  }
  0x14   :  { %37 = dma.hbm_to_vmem [thread:$0]  %s3398_s1, 1024, %s32_s19, [#allocation7], %s2906_s30, %s2906_s30, %s2907_s6  }
  0x15   :  { %s2786_s11 = scalar_lea.hbm %s3400_s3, 128 }
  0x16   :  { %p2787_p8 = scmp.ne.s32.totalorder %s3400_s3, %s2786_s11  ;;  %p2790_p9 = scmp.lt.u32.totalorder %s2786_s11, %s3400_s3 }
  0x18   :  { %p2792_p10 = pnand %p2790_p9, %p2787_p8 }
  0x1a   :  { %2795 = shalt.err (!%p2792_p10)
}
  0x1b   :  { %s2796_s16 = scalar_lea.vmem %s57_s21, 128  ;;  %p2801_p12 = scmp.lt.s32.totalorder %s57_s21, %s57_s21 }
  0x1c   :  { %p2797_p11 = scmp.ne.s32.totalorder %s57_s21, %s2796_s16  ;;  %p2802_p13 = scmp.lt.s32.totalorder %s2796_s16, %s2796_s16 }
  0x1e   :  { %p2803_p0 = por %p2802_p13, %p2801_p12 }
  0x20   :  { %p2804_p1 = pnand %p2803_p0, %p2797_p11 }
  0x22   :  { %2807 = shalt.err (!%p2804_p1)
}
  0x23   :  { %59 = dma.hbm_to_vmem [thread:$0]  %s3400_s3, 128, %s57_s21, [#allocation10]  }
  0x24   :  { %s2908_s18 = smov [#allocation3]   ;;  %s2909_s20 = smov [#allocation8]  }
  0x25   :  { %s19_s19 = sshll.u32 %s2908_s18, 4  ;;  %s43_s22 = sshll.u32 %s2909_s20, 4  ;;  %s20_s19 = int_to_ptr.vmem [resolvable:$true] %s19_s19  ;;  %s2973_s22 = int_to_ptr.vmem [resolvable:$true] %s43_s22 }
  0x26   :  { %s2808_s25 = scalar_lea.hbm %s3397_s0, 1024 }
  0x27   :  { %p2809_p2 = scmp.ne.s32.totalorder %s3397_s0, %s2808_s25  ;;  %p2812_p3 = scmp.lt.u32.totalorder %s2808_s25, %s3397_s0 }
  0x29   :  { %p2814_p4 = pnand %p2812_p3, %p2809_p2 }
  0x2b   :  { %2817 = shalt.err (!%p2814_p4)
}
  0x2c   :  { %s2818_s3 = scalar_lea.vmem %s20_s19, 1024  ;;  %p2823_p6 = scmp.lt.s32.totalorder %s20_s19, %s20_s19 }
  0x2d   :  { %p2819_p5 = scmp.ne.s32.totalorder %s20_s19, %s2818_s3  ;;  %p2824_p7 = scmp.lt.s32.totalorder %s2818_s3, %s2818_s3 }
  0x2f   :  { %p2825_p8 = por %p2824_p7, %p2823_p6 }
  0x31   :  { %p2826_p9 = pnand %p2825_p8, %p2819_p5 }
  0x33   :  { %2829 = shalt.err (!%p2826_p9)
}
  0x34   :  { %25 = dma.hbm_to_vmem [thread:$0]  %s3397_s0, 1024, %s20_s19, [#allocation4], %s2906_s30, %s2906_s30, %s2907_s6  }
  0x35   :  { %s2830_s10 = scalar_lea.hbm %s3399_s2, 1024 }
  0x36   :  { %p2831_p10 = scmp.ne.s32.totalorder %s3399_s2, %s2830_s10  ;;  %p2834_p11 = scmp.lt.u32.totalorder %s2830_s10, %s3399_s2 }
  0x38   :  { %p2836_p12 = pnand %p2834_p11, %p2831_p10 }
  0x3a   :  { %2839 = shalt.err (!%p2836_p12)
}
  0x3b   :  { %s2840_s15 = scalar_lea.vmem %s2973_s22, 1024  ;;  %p2845_p0 = scmp.lt.s32.totalorder %s2973_s22, %s2973_s22 }
  0x3c   :  { %p2841_p13 = scmp.ne.s32.totalorder %s2973_s22, %s2840_s15  ;;  %p2846_p1 = scmp.lt.s32.totalorder %s2840_s15, %s2840_s15 }
  0x3e   :  { %p2847_p2 = por %p2846_p1, %p2845_p0 }
  0x40   :  { %p2848_p3 = pnand %p2847_p2, %p2841_p13 }
  0x42   :  { %2851 = shalt.err (!%p2848_p3)
}
  0x43   :  { %s2910_s0 = smov 512   ;;  %s2911_s16 = smov 32  }
  0x44   :  { %49 = dma.hbm_to_vmem [thread:$0]  %s3399_s2, 1024, %s2973_s22, [#allocation7], %s2910_s0, %s2910_s0, %s2911_s16  }
  0x45   :  { %s2912_s18 = smov [#allocation11]   ;;  %s2852_s24 = scalar_lea.hbm %s3401_s4, 8192 }
  0x46   :  { %s65_s19 = sshll.u32 %s2912_s18, 4  ;;  %p2853_p4 = scmp.ne.s32.totalorder %s3401_s4, %s2852_s24  ;;  %s66_s19 = int_to_ptr.vmem [resolvable:$true] %s65_s19 }
  0x47   :  { %p2856_p5 = scmp.lt.u32.totalorder %s2852_s24, %s3401_s4 }
  0x49   :  { %p2858_p6 = pnand %p2856_p5, %p2853_p4 }
  0x4b   :  { %2861 = shalt.err (!%p2858_p6)
}
  0x4c   :  { %s2862_s29 = scalar_lea.vmem %s66_s19, 8192  ;;  %p2867_p8 = scmp.lt.s32.totalorder %s66_s19, %s66_s19 }
  0x4d   :  { %p2863_p7 = scmp.ne.s32.totalorder %s66_s19, %s2862_s29  ;;  %p2868_p9 = scmp.lt.s32.totalorder %s2862_s29, %s2862_s29 }
  0x4f   :  { %p2869_p10 = por %p2868_p9, %p2867_p8 }
  0x51   :  { %p2870_p11 = pnand %p2869_p10, %p2863_p7 }
  0x53   :  { %2873 = shalt.err (!%p2870_p11)
}
  0x54   :  { %71 = dma.hbm_to_vmem [thread:$0]  %s3401_s4, 8192, %s66_s19, [#allocation10], %s2906_s30, %s2906_s30, %s2907_s6  }
  0x55   :  { %2896 = dma.done.wait [#allocation4], 1024  }
  0x56   :  { %2897 = vsyncadd [#allocation4], 4294966272 }
  0x57   :  { %2898 = dma.done.wait [#allocation7], 2048  }
  0x58   :  { %2899 = vsyncadd [#allocation7], 4294965248 }
  0x59   :  { %2900 = dma.done.wait [#allocation10], 8320  }
  0x5a   :  { %2901 = vsyncadd [#allocation10], 4294958976  ;;  %vm92_vm0 = vcmask 130048   ;;  %v2913_v0 = vmov 0.0   ;;  %v2684_v1 = vld [vmem:[#allocation6] sm:$0xff]   ;;  %v2685_v2 = vld [vmem:[#allocation6 + $0x8] sm:$0xff]  }
  0x5b   :  { %95 = vst.msk [vmem:[#allocation2 + $0x10] sm:$0xff] %vm92_vm0, %v2913_v0  ;;  %93 = vst.msk [vmem:[#allocation2] sm:$0xff] %vm92_vm0, %v2913_v0  ;;  %2638 = vmatprep.subr.bf16.mxu0 %v2684_v1  ;;  %v2686_v3 = vld [vmem:[#allocation6 + $0x10] sm:$0xff]   ;;  %v2687_v4 = vld [vmem:[#allocation6 + $0x18] sm:$0xff]   ;;  %v2914_v27 = vmov 0   ;;  %s2915_s4 = smov [#allocation12]  }
  0x5c   :  { %94 = vst.msk [vmem:[#allocation2 + $0x8] sm:$0xff] %vm92_vm0, %v2913_v0  ;;  %96 = vst.msk [vmem:[#allocation2 + $0x18] sm:$0xff] %vm92_vm0, %v2913_v0  ;;  %2639 = vmatpush3.bf16.msra.mxu0 %v2684_v1  ;;  %v2692_v5 = vld [vmem:[#allocation3] sm:$0xff]   ;;  %v2689_v7 = vld [vmem:[#allocation6 + $0x28] sm:$0xff]   ;;  %556 = vmatprep.mubr.bf16.mxu1 %v2914_v27  ;;  %s2153_s3 = sshll.u32 %s2915_s4, 4  ;;  %s2154_s3 = int_to_ptr.vmem [resolvable:$true] %s2153_s3 }
  0x5d   :  { %97 = vst.msk [vmem:[#allocation2 + $0x20] sm:$0xff] %vm92_vm0, %v2913_v0  ;;  %98 = vst.msk [vmem:[#allocation2 + $0x28] sm:$0xff] %vm92_vm0, %v2913_v0  ;;  %2640 = vmatprep.subr.bf16.mxu0 %v2685_v2  ;;  %2654 = vmatprep.mubr.bf16.mxu0 %v2692_v5  ;;  %v2688_v6 = vld [vmem:[#allocation6 + $0x20] sm:$0xff]   ;;  %v2690_v8 = vld [vmem:[#allocation6 + $0x30] sm:$0xff]   ;;  %s2874_s21 = scalar_lea.vmem %s2154_s3, 1024  ;;  %p2879_p13 = scmp.lt.s32.totalorder %s2154_s3, %s2154_s3 }
  0x5e   :  { %99 = vst.msk [vmem:[#allocation2 + $0x30] sm:$0xff] %vm92_vm0, %v2913_v0  ;;  %100 = vst.msk [vmem:[#allocation2 + $0x38] sm:$0xff] %vm92_vm0, %v2913_v0  ;;  %v2691_v9 = vld [vmem:[#allocation6 + $0x38] sm:$0xff]   ;;  %v2693_v10 = vld [vmem:[#allocation3 + $0x8] sm:$0xff]   ;;  %p2875_p12 = scmp.ne.s32.totalorder %s2154_s3, %s2874_s21  ;;  %p2880_p0 = scmp.lt.s32.totalorder %s2874_s21, %s2874_s21 }
  0x5f   :  { %101 = vst.msk [vmem:[#allocation2 + $0x40] sm:$0xff] %vm92_vm0, %v2913_v0  ;;  %102 = vst.msk [vmem:[#allocation2 + $0x48] sm:$0xff] %vm92_vm0, %v2913_v0  ;;  %v2694_v11 = vld [vmem:[#allocation3 + $0x10] sm:$0xff]   ;;  %v2695_v12 = vld [vmem:[#allocation3 + $0x18] sm:$0xff]  }
  0x60   :  { %103 = vst.msk [vmem:[#allocation2 + $0x50] sm:$0xff] %vm92_vm0, %v2913_v0  ;;  %104 = vst.msk [vmem:[#allocation2 + $0x58] sm:$0xff] %vm92_vm0, %v2913_v0  ;;  %2641 = vmatpush3.bf16.msra.mxu0 %v2685_v2  ;;  %v2696_v13 = vld [vmem:[#allocation3 + $0x20] sm:$0xff]   ;;  %v2697_v14 = vld [vmem:[#allocation3 + $0x28] sm:$0xff]   ;;  %p2881_p1 = por %p2880_p0, %p2879_p13 }
  0x61   :  { %105 = vst.msk [vmem:[#allocation2 + $0x60] sm:$0xff] %vm92_vm0, %v2913_v0  ;;  %106 = vst.msk [vmem:[#allocation2 + $0x68] sm:$0xff] %vm92_vm0, %v2913_v0  ;;  %2642 = vmatprep.subr.bf16.mxu0 %v2686_v3  ;;  %v2698_v15 = vld [vmem:[#allocation3 + $0x30] sm:$0xff]   ;;  %v2699_v16 = vld [vmem:[#allocation3 + $0x38] sm:$0xff]  }
  0x62   :  { %107 = vst.msk [vmem:[#allocation2 + $0x70] sm:$0xff] %vm92_vm0, %v2913_v0  ;;  %108 = vst.msk [vmem:[#allocation2 + $0x78] sm:$0xff] %vm92_vm0, %v2913_v0  ;;  %v410_v17 = vld [vmem:[#allocation8] sm:$0xff]  ;;  %v411_v19 = vld [vmem:[#allocation8 + $0x8] sm:$0xff]  ;;  %p2882_p2 = pnand %p2881_p1, %p2875_p12 }
  0x63   :  { %v414_v18 = vld [vmem:[#allocation8 + $0x20] sm:$0xff]  ;;  %v415_v22 = vld [vmem:[#allocation8 + $0x28] sm:$0xff]  ;;  %v412_v25 = vld [vmem:[#allocation8 + $0x10] sm:$0xff] }
  0x64   :  { %2643 = vmatpush3.bf16.msra.mxu0 %v2686_v3  ;;  %v2184_v20 = vcombine.high %v410_v17, %v414_v18  ;;  %v2183_v21 = vcombine.low %v410_v17, %v414_v18  ;;  %v2185_v23 = vcombine.low %v411_v19, %v415_v22  ;;  %v2186_v24 = vcombine.high %v411_v19, %v415_v22  ;;  %v416_v26 = vld [vmem:[#allocation8 + $0x30] sm:$0xff]  ;;  %v413_v30 = vld [vmem:[#allocation8 + $0x18] sm:$0xff]  ;;  %v109_v35 = vld [vmem:[#allocation2] sm:$0xff] }
  0x65   :  { %2644 = vmatprep.subr.bf16.mxu0 %v2687_v4  ;;  %v2187_v28 = vcombine.low %v412_v25, %v416_v26  ;;  %v2188_v29 = vcombine.high %v412_v25, %v416_v26  ;;  %v417_v31 = vld [vmem:[#allocation8 + $0x38] sm:$0xff]  ;;  %v111_v34 = vld [vmem:[#allocation2 + $0x10] sm:$0xff]  ;;  %v110_v40 = vld [vmem:[#allocation2 + $0x8] sm:$0xff] }
  0x66   :  { %524 = vmatprep.subr.bf16.mxu1 %v2184_v20  ;;  %v3040_v32 = vcombine.low %v413_v30, %v417_v31  ;;  %v2190_v33 = vcombine.high %v413_v30, %v417_v31  ;;  %v112_v37 = vld [vmem:[#allocation2 + $0x18] sm:$0xff]  ;;  %v115_v46 = vld [vmem:[#allocation2 + $0x30] sm:$0xff]  ;;  %v113_v47 = vld [vmem:[#allocation2 + $0x20] sm:$0xff] }
  0x67   :  { %525 = vmatpush1.bf16.msra.mxu1 %v2183_v21  ;;  %v116_v49 = vld [vmem:[#allocation2 + $0x38] sm:$0xff]  ;;  %v114_v52 = vld [vmem:[#allocation2 + $0x28] sm:$0xff]  ;;  %v119_v61 = vld [vmem:[#allocation2 + $0x50] sm:$0xff] }
  0x68   :  { %2645 = vmatpush3.bf16.msra.mxu0 %v2687_v4  ;;  %750 = vmatprep.subr.bf16.mxu1 %v2188_v29  ;;  %v117_v62 = vld [vmem:[#allocation2 + $0x40] sm:$0xff]  ;;  %v120_v0 = vld [vmem:[#allocation2 + $0x58] sm:$0xff]  ;;  %v118_v3 = vld [vmem:[#allocation2 + $0x48] sm:$0xff] }
  0x69   :  { %2646 = vmatprep.subr.bf16.mxu0 %v2688_v6  ;;  %v122_v18 = vld [vmem:[#allocation2 + $0x68] sm:$0xff] }
  0x6a   :  { %v2701_v31 = vld [vmem:[#allocation11 + $0xc0] sm:$0xff]  }
  0x6c   :  { %2647 = vmatpush3.bf16.msra.mxu0 %v2688_v6 }
  0x6d   :  { %2648 = vmatprep.subr.bf16.mxu0 %v2689_v7 }
  0x70   :  { %2649 = vmatpush3.bf16.msra.mxu0 %v2689_v7 }
  0x71   :  { %2650 = vmatprep.subr.bf16.mxu0 %v2690_v8 }
  0x74   :  { %2651 = vmatpush3.bf16.msra.mxu0 %v2690_v8 }
  0x75   :  { %2652 = vmatprep.subr.bf16.mxu0 %v2691_v9 }
  0x78   :  { %2653 = vmatpush3.bf16.msra.mxu0 %v2691_v9 }
  0x79   :  { %637 = vmatprep.subr.bf16.mxu0 %v2186_v24 }
  0x7b   :  { %2655 = vmatmul.mubr.bf16.vlgmr.msra.gmra.mrb[0].mxu0 %v2693_v10 }
  0x7c   :  { %2658 = vmatprep.mubr.bf16.mxu0 %v2694_v11  ;;  %638 = vmatpush1.bf16.msra.mxu0 %v2185_v23 }
  0x7d   :  { %863 = vmatprep.subr.bf16.mxu0 %v2190_v33 }
  0x83   :  { %2659 = vmatmul.mubr.bf16.gmra.mrb[4].mxu0 %v2695_v12  ;;  %v123_v12 = vld [vmem:[#allocation2 + $0x70] sm:$0xff] }
  0x84   :  { %2662 = vmatprep.mubr.bf16.mxu0 %v2696_v13  ;;  %v121_v13 = vld [vmem:[#allocation2 + $0x60] sm:$0xff] }
  0x8b   :  { %2663 = vmatmul.mubr.bf16.gmra.mrb[8].mxu0 %v2697_v14 }
  0x8c   :  { %2666 = vmatprep.mubr.bf16.mxu0 %v2698_v15  ;;  %v124_v15 = vld [vmem:[#allocation2 + $0x78] sm:$0xff] }
  0x93   :  { %2667 = vmatmul.mubr.bf16.gmra.mrb[12].mxu0 %v2699_v16 }
  0x94   :  { %669 = vmatprep.mubr.bf16.mxu0 %v2914_v27 }
 0x14e   :  { %v2656_v36 = vpop.f32.mrb[0].mxu0 }
 0x14f   :  { %v352_v38 = vadd.f32 %v2656_v36, %v111_v34  ;;  %v287_v39 = vpop.f32.mrb[1].mxu0 }
 0x150   :  { %v350_v41 = vadd.f32 %v287_v39, %v109_v35  ;;  %v2657_v42 = vpop.f32.mrb[2].mxu0 }
 0x151   :  { %369 = vst.msk [vmem:[#allocation2 + $0x10] sm:$0xff] %vm92_vm0, %v352_v38  ;;  %v353_v43 = vadd.f32 %v2657_v42, %v112_v37  ;;  %v290_v44 = vpop.f32.mrb[3].mxu0 }
 0x152   :  { %367 = vst.msk [vmem:[#allocation2] sm:$0xff] %vm92_vm0, %v350_v41  ;;  %v351_v45 = vadd.f32 %v290_v44, %v110_v40 }
 0x153   :  { %370 = vst.msk [vmem:[#allocation2 + $0x18] sm:$0xff] %vm92_vm0, %v353_v43 }
 0x154   :  { %368 = vst.msk [vmem:[#allocation2 + $0x8] sm:$0xff] %vm92_vm0, %v351_v45  ;;  %v2700_v45 = vld [vmem:[#allocation11 + $0x40] sm:$0xff]  }
 0x156   :  { %v2660_v48 = vpop.f32.mrb[4].mxu0 }
 0x157   :  { %v356_v50 = vadd.f32 %v2660_v48, %v115_v46  ;;  %v303_v51 = vpop.f32.mrb[5].mxu0  ;;  %v2703_v46 = vld [vmem:[#allocation11 + $0x80] sm:$0xff]   ;;  %v2707_v48 = vld [vmem:[#allocation11 + $0x88] sm:$0xff]  }
 0x158   :  { %v354_v53 = vadd.f32 %v303_v51, %v113_v47  ;;  %v2661_v54 = vpop.f32.mrb[6].mxu0  ;;  %v388_v10 = vld [vmem:[#allocation2 + $0x10] sm:$0xff]  ;;  %v2713_v51 = vld [vmem:[#allocation11 + $0xd8] sm:$0xff]  }
 0x159   :  { %373 = vst.msk [vmem:[#allocation2 + $0x30] sm:$0xff] %vm92_vm0, %v356_v50  ;;  %v357_v55 = vadd.f32 %v2661_v54, %v116_v49  ;;  %v306_v56 = vpop.f32.mrb[7].mxu0  ;;  %v386_v58 = vld [vmem:[#allocation2] sm:$0xff]  ;;  %v2705_v47 = vld [vmem:[#allocation11 + $0xc8] sm:$0xff]   ;;  %v2709_v49 = vld [vmem:[#allocation11 + $0xd0] sm:$0xff]  }
 0x15a   :  { %371 = vst.msk [vmem:[#allocation2 + $0x20] sm:$0xff] %vm92_vm0, %v354_v53  ;;  %v355_v57 = vadd.f32 %v306_v56, %v114_v52  ;;  %v389_v6 = vld [vmem:[#allocation2 + $0x18] sm:$0xff]  ;;  %v2717_v52 = vld [vmem:[#allocation11 + $0xe0] sm:$0xff]   ;;  %v2721_v54 = vld [vmem:[#allocation11 + $0xe8] sm:$0xff]  }
 0x15b   :  { %374 = vst.msk [vmem:[#allocation2 + $0x38] sm:$0xff] %vm92_vm0, %v357_v55  ;;  %v387_v59 = vld [vmem:[#allocation2 + $0x8] sm:$0xff]  ;;  %v3062_v11 = vpack.c.bf16 %v389_v6, %v388_v10  ;;  %v2711_v50 = vld [vmem:[#allocation11 + $0x90] sm:$0xff]   ;;  %v2723_v55 = vld [vmem:[#allocation11 + $0xa8] sm:$0xff]  }
 0x15c   :  { %372 = vst.msk [vmem:[#allocation2 + $0x28] sm:$0xff] %vm92_vm0, %v355_v57  ;;  %v3050_v60 = vpack.c.bf16 %v387_v59, %v386_v58  ;;  %v2719_v53 = vld [vmem:[#allocation11 + $0xa0] sm:$0xff]   ;;  %v2725_v56 = vld [vmem:[#allocation11 + $0xf0] sm:$0xff]   ;;  %v2729_v58 = vld [vmem:[#allocation11 + $0xf8] sm:$0xff]  }
 0x15d   :  { %v2727_v57 = vld [vmem:[#allocation11 + $0xb0] sm:$0xff]   ;;  %v2731_v59 = vld [vmem:[#allocation11 + $0xb8] sm:$0xff]   ;;  %v2720_v6 = vld [vmem:[#allocation11 + $0x68] sm:$0xff]  }
 0x15e   :  { %2191 = vmatmul.mubr.msk.bf16.vlgmr.msra.gmra.mrb[0].mxu1 %vm92_vm0, %v3050_v60  ;;  %2199 = vmatmul.mubr.msk.bf16.vlgmr.msra.gmra.mrb[16].mxu0 %vm92_vm0, %v3050_v60  ;;  %v2664_v63 = vpop.f32.mrb[8].mxu0  ;;  %v2728_v10 = vld [vmem:[#allocation11 + $0x78] sm:$0xff]  }
 0x15f   :  { %751 = vmatpush1.bf16.msra.mxu1 %v2187_v28  ;;  %566 = vmatprep.mubr.bf16.mxu1 %v2914_v27  ;;  %v360_v1 = vadd.f32 %v2664_v63, %v119_v61  ;;  %v319_v2 = vpop.f32.mrb[9].mxu0  ;;  %v2702_v61 = vld [vmem:[#allocation11] sm:$0xff]   ;;  %v2706_v63 = vld [vmem:[#allocation11 + $0x8] sm:$0xff]  }
 0x160   :  { %679 = vmatprep.mubr.bf16.mxu0 %v2914_v27  ;;  %v358_v4 = vadd.f32 %v319_v2, %v117_v62  ;;  %v2665_v5 = vpop.f32.mrb[10].mxu0  ;;  %864 = vmatpush1.bf16.msra.mxu0 %v3040_v32  ;;  %v392_v28 = vld [vmem:[#allocation2 + $0x30] sm:$0xff]  ;;  %v2712_v2 = vld [vmem:[#allocation11 + $0x58] sm:$0xff]  }
 0x161   :  { %377 = vst.msk [vmem:[#allocation2 + $0x50] sm:$0xff] %vm92_vm0, %v360_v1  ;;  %v361_v7 = vadd.f32 %v2665_v5, %v120_v0  ;;  %v322_v8 = vpop.f32.mrb[11].mxu0  ;;  %2670 = vmatprep.subr.bf16.mxu1 %v2190_v33  ;;  %v390_v21 = vld [vmem:[#allocation2 + $0x20] sm:$0xff]  ;;  %2446 = vmatprep.subr.bf16.mxu0 %v2701_v31  ;;  %v2704_v62 = vld [vmem:[#allocation11 + $0x48] sm:$0xff]   ;;  %v2708_v0 = vld [vmem:[#allocation11 + $0x50] sm:$0xff]  }
 0x162   :  { %375 = vst.msk [vmem:[#allocation2 + $0x40] sm:$0xff] %vm92_vm0, %v358_v4  ;;  %v359_v9 = vadd.f32 %v322_v8, %v118_v3  ;;  %v393_v29 = vld [vmem:[#allocation2 + $0x38] sm:$0xff]  ;;  %v2714_v3 = vld [vmem:[#allocation11 + $0x18] sm:$0xff]   ;;  %v2716_v4 = vld [vmem:[#allocation11 + $0x60] sm:$0xff]  }
 0x163   :  { %378 = vst.msk [vmem:[#allocation2 + $0x58] sm:$0xff] %vm92_vm0, %v361_v7  ;;  %v391_v22 = vld [vmem:[#allocation2 + $0x28] sm:$0xff]  ;;  %v3083_v30 = vpack.c.bf16 %v393_v29, %v392_v28  ;;  %v2710_v1 = vld [vmem:[#allocation11 + $0x10] sm:$0xff]   ;;  %v2722_v7 = vld [vmem:[#allocation11 + $0x28] sm:$0xff]  }
 0x164   :  { %376 = vst.msk [vmem:[#allocation2 + $0x48] sm:$0xff] %vm92_vm0, %v359_v9  ;;  %v3074_v26 = vpack.c.bf16 %v391_v22, %v390_v21  ;;  %v2718_v5 = vld [vmem:[#allocation11 + $0x20] sm:$0xff]   ;;  %v2724_v8 = vld [vmem:[#allocation11 + $0x70] sm:$0xff]  }
 0x165   :  { %v2726_v9 = vld [vmem:[#allocation11 + $0x30] sm:$0xff]  }
 0x166   :  { %2192 = vmatmul.mubr.msk.bf16.gmra.mrb[4].mxu1 %vm92_vm0, %v3062_v11  ;;  %2200 = vmatmul.mubr.msk.bf16.gmra.mrb[20].mxu0 %vm92_vm0, %v3062_v11  ;;  %v2668_v14 = vpop.f32.mrb[12].mxu0 }
 0x167   :  { %576 = vmatprep.mubr.bf16.mxu1 %v2914_v27  ;;  %689 = vmatprep.mubr.bf16.mxu0 %v2914_v27  ;;  %v364_v16 = vadd.f32 %v2668_v14, %v123_v12  ;;  %v335_v17 = vpop.f32.mrb[13].mxu0  ;;  %v2732_v12 = vld [vmem:[#allocation11 + $0x140] sm:$0xff]  }
 0x168   :  { %v362_v19 = vadd.f32 %v335_v17, %v121_v13  ;;  %v2669_v20 = vpop.f32.mrb[14].mxu0  ;;  %v396_v36 = vld [vmem:[#allocation2 + $0x50] sm:$0xff]  ;;  %v420_v13 = vlaneseq }
 0x169   :  { %381 = vst.msk [vmem:[#allocation2 + $0x70] sm:$0xff] %vm92_vm0, %v364_v16  ;;  %v365_v23 = vadd.f32 %v2669_v20, %v124_v15  ;;  %v338_v24 = vpop.f32.mrb[15].mxu0  ;;  %v394_v33 = vld [vmem:[#allocation2 + $0x40] sm:$0xff] }
 0x16a   :  { %379 = vst.msk [vmem:[#allocation2 + $0x60] sm:$0xff] %vm92_vm0, %v362_v19  ;;  %v363_v25 = vadd.f32 %v338_v24, %v122_v18  ;;  %v397_v37 = vld [vmem:[#allocation2 + $0x58] sm:$0xff]  ;;  %v3170_v14 = vshrl.u32 %v420_v13, 7  ;;  %v3174_v16 = vld [vmem:[#allocation9] sm:$0xff] }
 0x16b   :  { %382 = vst.msk [vmem:[#allocation2 + $0x78] sm:$0xff] %vm92_vm0, %v365_v23  ;;  %v395_v34 = vld [vmem:[#allocation2 + $0x48] sm:$0xff]  ;;  %v3099_v38 = vpack.c.bf16 %v397_v37, %v396_v36 }
 0x16c   :  { %380 = vst.msk [vmem:[#allocation2 + $0x68] sm:$0xff] %vm92_vm0, %v363_v25  ;;  %v3091_v35 = vpack.c.bf16 %v395_v34, %v394_v33  ;;  %v430_v15 = vsub.s32 2, %v3170_v14  ;;  %v426_v17 = vsub.s32 1, %v3170_v14  ;;  %v434_v18 = vsub.s32 3, %v3170_v14 }
 0x16e   :  { %2193 = vmatmul.mubr.msk.bf16.gmra.mrb[8].mxu1 %vm92_vm0, %v3074_v26  ;;  %2201 = vmatmul.mubr.msk.bf16.gmra.mrb[24].mxu0 %vm92_vm0, %v3074_v26  ;;  %v3182_v20 = vrot.slane %v3174_v16, %v430_v15  ;;  %v3185_v21 = vrot.slane %v3174_v16, %v426_v17  ;;  %v3188_v22 = vrot.slane %v3174_v16, %v434_v18  ;;  %v2741_v15 = vld [vmem:[#allocation11 + $0x1d0] sm:$0xff]  }
 0x16f   :  { %586 = vmatprep.mubr.bf16.mxu1 %v2914_v27  ;;  %699 = vmatprep.mubr.bf16.mxu0 %v2914_v27 }
 0x170   :  { %v400_v42 = vld [vmem:[#allocation2 + $0x70] sm:$0xff] }
 0x171   :  { %v398_v39 = vld [vmem:[#allocation2 + $0x60] sm:$0xff] }
 0x172   :  { %v401_v43 = vld [vmem:[#allocation2 + $0x78] sm:$0xff] }
 0x173   :  { %v399_v40 = vld [vmem:[#allocation2 + $0x68] sm:$0xff]  ;;  %v3115_v44 = vpack.c.bf16 %v401_v43, %v400_v42 }
 0x174   :  { %v3107_v41 = vpack.c.bf16 %v399_v40, %v398_v39 }
 0x176   :  { %2194 = vmatmul.mubr.msk.bf16.gmra.mrb[12].mxu1 %vm92_vm0, %v3083_v30  ;;  %2202 = vmatmul.mubr.msk.bf16.gmra.mrb[28].mxu0 %vm92_vm0, %v3083_v30 }
 0x177   :  { %596 = vmatprep.mubr.bf16.mxu1 %v2914_v27  ;;  %709 = vmatprep.mubr.bf16.mxu0 %v2914_v27 }
 0x17e   :  { %2195 = vmatmul.mubr.msk.bf16.gmra.mrb[16].mxu1 %vm92_vm0, %v3091_v35  ;;  %2203 = vmatmul.mubr.msk.bf16.gmra.mrb[32].mxu0 %vm92_vm0, %v3091_v35 }
 0x17f   :  { %606 = vmatprep.mubr.bf16.mxu1 %v2914_v27  ;;  %719 = vmatprep.mubr.bf16.mxu0 %v2914_v27 }
 0x186   :  { %2196 = vmatmul.mubr.msk.bf16.gmra.mrb[20].mxu1 %vm92_vm0, %v3099_v38  ;;  %2204 = vmatmul.mubr.msk.bf16.gmra.mrb[36].mxu0 %vm92_vm0, %v3099_v38 }
 0x187   :  { %616 = vmatprep.mubr.bf16.mxu1 %v2914_v27  ;;  %729 = vmatprep.mubr.bf16.mxu0 %v2914_v27 }
 0x18e   :  { %2197 = vmatmul.mubr.msk.bf16.gmra.mrb[24].mxu1 %vm92_vm0, %v3107_v41  ;;  %2205 = vmatmul.mubr.msk.bf16.gmra.mrb[40].mxu0 %vm92_vm0, %v3107_v41 }
 0x18f   :  { %626 = vmatprep.mubr.bf16.mxu1 %v2914_v27  ;;  %739 = vmatprep.mubr.bf16.mxu0 %v2914_v27 }
 0x196   :  { %2198 = vmatmul.mubr.msk.bf16.gmra.mrb[28].mxu1 %vm92_vm0, %v3115_v44  ;;  %2206 = vmatmul.mubr.msk.bf16.gmra.mrb[44].mxu0 %vm92_vm0, %v3115_v44 }
 0x197   :  { %782 = vmatprep.mubr.bf16.mxu1 %v2914_v27  ;;  %895 = vmatprep.mubr.bf16.mxu0 %v2914_v27 }
 0x19e   :  { %2207 = vmatmul.mubr.msk.bf16.vlgmr.msra.gmra.mrb[32].mxu1 %vm92_vm0, %v3050_v60  ;;  %2215 = vmatmul.mubr.msk.bf16.vlgmr.msra.gmra.mrb[48].mxu0 %vm92_vm0, %v3050_v60  ;;  %v2734_v60 = vld [vmem:[#allocation11 + $0x1c0] sm:$0xff]  }
 0x19f   :  { %2671 = vmatpush1.bf16.msra.mxu1 %v3040_v32  ;;  %792 = vmatprep.mubr.bf16.mxu1 %v2914_v27  ;;  %v2715_v32 = vld [vmem:[#allocation11 + $0x98] sm:$0xff]  }
 0x1a0   :  { %905 = vmatprep.mubr.bf16.mxu0 %v2914_v27  ;;  %2382 = vmatprep.subr.bf16.mxu1 %v2700_v45 }
 0x1a1   :  { %2447 = vmatpush3.bf16.msra.mxu0 %v2703_v46 }
 0x1a2   :  { %2448 = vmatprep.subr.bf16.mxu0 %v2705_v47 }
 0x1a5   :  { %2449 = vmatpush3.bf16.msra.mxu0 %v2707_v48 }
 0x1a6   :  { %2208 = vmatmul.mubr.msk.bf16.gmra.mrb[36].mxu1 %vm92_vm0, %v3062_v11  ;;  %2216 = vmatmul.mubr.msk.bf16.gmra.mrb[52].mxu0 %vm92_vm0, %v3062_v11  ;;  %v2730_v11 = vld [vmem:[#allocation11 + $0x38] sm:$0xff]  }
 0x1a7   :  { %802 = vmatprep.mubr.bf16.mxu1 %v2914_v27  ;;  %915 = vmatprep.mubr.bf16.mxu0 %v2914_v27 }
 0x1a8   :  { %2450 = vmatprep.subr.bf16.mxu0 %v2709_v49 }
 0x1a9   :  { %2451 = vmatpush3.bf16.msra.mxu0 %v2711_v50 }
 0x1aa   :  { %2452 = vmatprep.subr.bf16.mxu0 %v2713_v51 }
 0x1ad   :  { %2453 = vmatpush3.bf16.msra.mxu0 %v2715_v32 }
 0x1ae   :  { %2209 = vmatmul.mubr.msk.bf16.gmra.mrb[40].mxu1 %vm92_vm0, %v3074_v26  ;;  %2217 = vmatmul.mubr.msk.bf16.gmra.mrb[56].mxu0 %vm92_vm0, %v3074_v26 }
 0x1af   :  { %812 = vmatprep.mubr.bf16.mxu1 %v2914_v27  ;;  %925 = vmatprep.mubr.bf16.mxu0 %v2914_v27 }
 0x1b0   :  { %2454 = vmatprep.subr.bf16.mxu0 %v2717_v52 }
 0x1b1   :  { %2455 = vmatpush3.bf16.msra.mxu0 %v2719_v53 }
 0x1b2   :  { %2456 = vmatprep.subr.bf16.mxu0 %v2721_v54  ;;  %v2733_v54 = vld [vmem:[#allocation11 + $0x100] sm:$0xff]  }
 0x1b5   :  { %2457 = vmatpush3.bf16.msra.mxu0 %v2723_v55  ;;  %v2735_v55 = vld [vmem:[#allocation11 + $0x180] sm:$0xff]  }
 0x1b6   :  { %2210 = vmatmul.mubr.msk.bf16.gmra.mrb[44].mxu1 %vm92_vm0, %v3083_v30  ;;  %2218 = vmatmul.mubr.msk.bf16.gmra.mrb[60].mxu0 %vm92_vm0, %v3083_v30 }
 0x1b7   :  { %822 = vmatprep.mubr.bf16.mxu1 %v2914_v27  ;;  %2458 = vmatprep.subr.bf16.mxu0 %v2725_v56 }
 0x1b9   :  { %2459 = vmatpush3.bf16.msra.mxu0 %v2727_v57 }
 0x1ba   :  { %2460 = vmatprep.subr.bf16.mxu0 %v2729_v58 }
 0x1bd   :  { %2461 = vmatpush3.bf16.msra.mxu0 %v2731_v59 }
 0x1be   :  { %2211 = vmatmul.mubr.msk.bf16.gmra.mrb[48].mxu1 %vm92_vm0, %v3091_v35  ;;  %2574 = vmatprep.subr.bf16.mxu0 %v2734_v60  ;;  %v2736_v60 = vld [vmem:[#allocation11 + $0x148] sm:$0xff]  }
 0x1bf   :  { %832 = vmatprep.mubr.bf16.mxu1 %v2914_v27 }
 0x1c6   :  { %2212 = vmatmul.mubr.msk.bf16.gmra.mrb[52].mxu1 %vm92_vm0, %v3099_v38 }
 0x1c7   :  { %842 = vmatprep.mubr.bf16.mxu1 %v2914_v27 }
 0x1ce   :  { %2213 = vmatmul.mubr.msk.bf16.gmra.mrb[56].mxu1 %vm92_vm0, %v3107_v41 }
 0x1cf   :  { %852 = vmatprep.mubr.bf16.mxu1 %v2914_v27 }
 0x1d6   :  { %2214 = vmatmul.mubr.msk.bf16.gmra.mrb[60].mxu1 %vm92_vm0, %v3115_v44 }
 0x1d7   :  { %935 = vmatprep.mubr.bf16.mxu1 %v2914_v27 }
 0x1de   :  { %2219 = vmatmul.mubr.msk.bf16.vlgmr.msra.gmra.mrb[64].mxu1 %vm92_vm0, %v3091_v35 }
 0x1df   :  { %945 = vmatprep.mubr.bf16.mxu1 %v2914_v27  ;;  %2383 = vmatpush3.bf16.msra.mxu1 %v2702_v61  ;;  %v2737_v61 = vld [vmem:[#allocation11 + $0x1c8] sm:$0xff]  }
 0x1e0   :  { %2384 = vmatprep.subr.bf16.mxu1 %v2704_v62 }
 0x1e3   :  { %2385 = vmatpush3.bf16.msra.mxu1 %v2706_v63 }
 0x1e4   :  { %2386 = vmatprep.subr.bf16.mxu1 %v2708_v0 }
 0x1e6   :  { %2220 = vmatmul.mubr.msk.bf16.gmra.mrb[68].mxu1 %vm92_vm0, %v3099_v38 }
 0x1e7   :  { %955 = vmatprep.mubr.bf16.mxu1 %v2914_v27  ;;  %2387 = vmatpush3.bf16.msra.mxu1 %v2710_v1 }
 0x1e8   :  { %2388 = vmatprep.subr.bf16.mxu1 %v2712_v2 }
 0x1eb   :  { %2389 = vmatpush3.bf16.msra.mxu1 %v2714_v3 }
 0x1ec   :  { %2390 = vmatprep.subr.bf16.mxu1 %v2716_v4 }
 0x1ee   :  { %2221 = vmatmul.mubr.msk.bf16.gmra.mrb[72].mxu1 %vm92_vm0, %v3107_v41 }
 0x1ef   :  { %965 = vmatprep.mubr.bf16.mxu1 %v2914_v27  ;;  %2391 = vmatpush3.bf16.msra.mxu1 %v2718_v5  ;;  %v422_v27 = vsub.s32 0, %v3170_v14 }
 0x1f0   :  { %2392 = vmatprep.subr.bf16.mxu1 %v2720_v6 }
 0x1f1   :  { %v3179_v19 = vrot.slane %v3174_v16, %v422_v27  ;;  %v2740_v27 = vld [vmem:[#allocation11 + $0x150] sm:$0xff]  }
 0x1f3   :  { %2393 = vmatpush3.bf16.msra.mxu1 %v2722_v7 }
 0x1f4   :  { %2394 = vmatprep.subr.bf16.mxu1 %v2724_v8  ;;  %v2738_v8 = vld [vmem:[#allocation11 + $0x108] sm:$0xff]  }
 0x1f6   :  { %2222 = vmatmul.mubr.msk.bf16.gmra.mrb[76].mxu1 %vm92_vm0, %v3115_v44 }
 0x1f7   :  { %2395 = vmatpush3.bf16.msra.mxu1 %v2726_v9  ;;  %v2739_v9 = vld [vmem:[#allocation11 + $0x188] sm:$0xff]  }
 0x1f8   :  { %2396 = vmatprep.subr.bf16.mxu1 %v2728_v10 }
 0x1fb   :  { %2397 = vmatpush3.bf16.msra.mxu1 %v2730_v11 }
 0x1fc   :  { %2510 = vmatprep.subr.bf16.mxu1 %v2732_v12 }
 0x231   :  { %v558_v23 = vpop.f32.mrb[0].mxu1  ;;  %v671_v24 = vpop.f32.mrb[16].mxu0 }
 0x232   :  { %v559_v25 = vadd.f32 %v558_v23, %v3179_v19  ;;  %v672_v26 = vadd.f32 %v671_v24, %v3182_v20  ;;  %v560_v28 = vpop.f32.mrb[1].mxu1  ;;  %v673_v29 = vpop.f32.mrb[17].mxu0 }
 0x233   :  { %v561_v30 = vadd.f32 %v560_v28, %v3185_v21  ;;  %v674_v31 = vadd.f32 %v673_v29, %v3188_v22  ;;  %v562_v33 = vpop.f32.mrb[2].mxu1  ;;  %v675_v34 = vpop.f32.mrb[18].mxu0 }
 0x234   :  { %v563_v35 = vadd.f32 %v562_v33, %v3179_v19  ;;  %v676_v36 = vadd.f32 %v675_v34, %v3182_v20  ;;  %v564_v37 = vpop.f32.mrb[3].mxu1  ;;  %v677_v38 = vpop.f32.mrb[19].mxu0  ;;  %v976_v41 = vmax.f32 %v559_v25, 0.0  ;;  %v978_v42 = vmax.f32 %v672_v26, 0.0  ;;  %v2742_v33 = vld [vmem:[#allocation11 + $0x110] sm:$0xff]  }
 0x235   :  { %v565_v39 = vadd.f32 %v564_v37, %v3185_v21  ;;  %v678_v40 = vadd.f32 %v677_v38, %v3188_v22  ;;  %v977_v45 = vmax.f32 %v561_v30, 0.0  ;;  %v979_v46 = vmax.f32 %v674_v31, 0.0  ;;  %v2743_v34 = vld [vmem:[#allocation11 + $0x190] sm:$0xff]  }
 0x236   :  { %v984_v43 = vmax.f32 %v563_v35, 0.0  ;;  %v986_v44 = vmax.f32 %v676_v36, 0.0 }
 0x237   :  { %v985_v47 = vmax.f32 %v565_v39, 0.0  ;;  %v987_v48 = vmax.f32 %v678_v40, 0.0  ;;  %v2744_v39 = vld [vmem:[#allocation11 + $0x158] sm:$0xff]  }
 0x238   :  { %v1104_v49 = vpack.c.bf16 %v984_v43, %v976_v41  ;;  %v1106_v50 = vpack.c.bf16 %v986_v44, %v978_v42  ;;  %v2745_v40 = vld [vmem:[#allocation11 + $0x1d8] sm:$0xff]  }
 0x239   :  { %v1105_v51 = vpack.c.bf16 %v985_v47, %v977_v45  ;;  %v1107_v32 = vpack.c.bf16 %v987_v48, %v979_v46  ;;  %v568_v52 = vpop.f32.mrb[4].mxu1  ;;  %v681_v53 = vpop.f32.mrb[20].mxu0 }
 0x23a   :  { %v569_v56 = vadd.f32 %v568_v52, %v3179_v19  ;;  %v682_v57 = vadd.f32 %v681_v53, %v3182_v20  ;;  %v570_v58 = vpop.f32.mrb[5].mxu1  ;;  %v683_v59 = vpop.f32.mrb[21].mxu0 }
 0x23b   :  { %v571_v62 = vadd.f32 %v570_v58, %v3185_v21  ;;  %v684_v63 = vadd.f32 %v683_v59, %v3188_v22  ;;  %v572_v0 = vpop.f32.mrb[6].mxu1  ;;  %v685_v1 = vpop.f32.mrb[22].mxu0  ;;  %1712 = vmatprep.mubr.bf16.mxu1 %v1105_v51  ;;  %1809 = vmatprep.mubr.bf16.mxu0 %v1107_v32  ;;  %v2746_v51 = vld [vmem:[#allocation11 + $0x118] sm:$0xff]  }
 0x23c   :  { %v573_v2 = vadd.f32 %v572_v0, %v3179_v19  ;;  %v686_v3 = vadd.f32 %v685_v1, %v3182_v20  ;;  %v574_v4 = vpop.f32.mrb[7].mxu1  ;;  %v687_v5 = vpop.f32.mrb[23].mxu0  ;;  %1713 = vmatmul.mubr.bf16.vlgmr.msra.gmra.mrb[80].mxu1 %v1104_v49  ;;  %1810 = vmatmul.mubr.bf16.vlgmr.msra.gmra.mrb[64].mxu0 %v1106_v50  ;;  %v992_v10 = vmax.f32 %v569_v56, 0.0  ;;  %v994_v11 = vmax.f32 %v682_v57, 0.0  ;;  %v2747_v32 = vld [vmem:[#allocation11 + $0x198] sm:$0xff]   ;;  %v2748_v56 = vld [vmem:[#allocation11 + $0x160] sm:$0xff]  }
 0x23d   :  { %v575_v6 = vadd.f32 %v574_v4, %v3185_v21  ;;  %v688_v7 = vadd.f32 %v687_v5, %v3188_v22  ;;  %2511 = vmatpush3.bf16.msra.mxu1 %v2733_v54  ;;  %2575 = vmatpush3.bf16.msra.mxu0 %v2735_v55  ;;  %v993_v17 = vmax.f32 %v571_v62, 0.0  ;;  %v995_v18 = vmax.f32 %v684_v63, 0.0  ;;  %v2749_v57 = vld [vmem:[#allocation11 + $0x1e0] sm:$0xff]  }
 0x23e   :  { %v1000_v12 = vmax.f32 %v573_v2, 0.0  ;;  %v1002_v13 = vmax.f32 %v686_v3, 0.0  ;;  %2512 = vmatprep.subr.bf16.mxu1 %v2736_v60  ;;  %2576 = vmatprep.subr.bf16.mxu0 %v2737_v61  ;;  %v2750_v4 = vld [vmem:[#allocation11 + $0x120] sm:$0xff]  }
 0x23f   :  { %v1001_v23 = vmax.f32 %v575_v6, 0.0  ;;  %v1003_v24 = vmax.f32 %v688_v7, 0.0  ;;  %v2751_v5 = vld [vmem:[#allocation11 + $0x1a0] sm:$0xff]  }
 0x240   :  { %v1112_v25 = vpack.c.bf16 %v1000_v12, %v992_v10  ;;  %v1114_v26 = vpack.c.bf16 %v1002_v13, %v994_v11  ;;  %v2752_v10 = vld [vmem:[#allocation11 + $0x168] sm:$0xff]  }
 0x241   :  { %v1113_v28 = vpack.c.bf16 %v1001_v23, %v993_v17  ;;  %v1115_v29 = vpack.c.bf16 %v1003_v24, %v995_v18  ;;  %v578_v30 = vpop.f32.mrb[8].mxu1  ;;  %v691_v31 = vpop.f32.mrb[24].mxu0  ;;  %2513 = vmatpush3.bf16.msra.mxu1 %v2738_v8  ;;  %2577 = vmatpush3.bf16.msra.mxu0 %v2739_v9  ;;  %v2753_v11 = vld [vmem:[#allocation11 + $0x1e8] sm:$0xff]  }
 0x242   :  { %v579_v35 = vadd.f32 %v578_v30, %v3179_v19  ;;  %v692_v36 = vadd.f32 %v691_v31, %v3182_v20  ;;  %v580_v37 = vpop.f32.mrb[9].mxu1  ;;  %v693_v38 = vpop.f32.mrb[25].mxu0  ;;  %2514 = vmatprep.subr.bf16.mxu1 %v2740_v27  ;;  %2578 = vmatprep.subr.bf16.mxu0 %v2741_v15 }
 0x243   :  { %v581_v41 = vadd.f32 %v580_v37, %v3185_v21  ;;  %v694_v42 = vadd.f32 %v693_v38, %v3188_v22  ;;  %v582_v43 = vpop.f32.mrb[10].mxu1  ;;  %v695_v44 = vpop.f32.mrb[26].mxu0  ;;  %1720 = vmatprep.mubr.bf16.mxu1 %v1113_v28  ;;  %1817 = vmatprep.mubr.bf16.mxu0 %v1115_v29  ;;  %v2754_v28 = vld [vmem:[#allocation11 + $0x128] sm:$0xff]  }
 0x244   :  { %v583_v45 = vadd.f32 %v582_v43, %v3179_v19  ;;  %v696_v46 = vadd.f32 %v695_v44, %v3182_v20  ;;  %v584_v47 = vpop.f32.mrb[11].mxu1  ;;  %v697_v48 = vpop.f32.mrb[27].mxu0  ;;  %1721 = vmatmul.mubr.bf16.gmra.mrb[84].mxu1 %v1112_v25  ;;  %1818 = vmatmul.mubr.bf16.gmra.mrb[68].mxu0 %v1114_v26  ;;  %v1008_v52 = vmax.f32 %v579_v35, 0.0  ;;  %v1010_v53 = vmax.f32 %v692_v36, 0.0  ;;  %v2755_v29 = vld [vmem:[#allocation11 + $0x1a8] sm:$0xff]   ;;  %v2756_v35 = vld [vmem:[#allocation11 + $0x170] sm:$0xff]  }
 0x245   :  { %v585_v49 = vadd.f32 %v584_v47, %v3185_v21  ;;  %v698_v50 = vadd.f32 %v697_v48, %v3188_v22  ;;  %2515 = vmatpush3.bf16.msra.mxu1 %v2742_v33  ;;  %2579 = vmatpush3.bf16.msra.mxu0 %v2743_v34  ;;  %v1009_v58 = vmax.f32 %v581_v41, 0.0  ;;  %v1011_v59 = vmax.f32 %v694_v42, 0.0  ;;  %v2757_v36 = vld [vmem:[#allocation11 + $0x1f0] sm:$0xff]  }
 0x246   :  { %v1016_v54 = vmax.f32 %v583_v45, 0.0  ;;  %v1018_v55 = vmax.f32 %v696_v46, 0.0  ;;  %2516 = vmatprep.subr.bf16.mxu1 %v2744_v39  ;;  %2580 = vmatprep.subr.bf16.mxu0 %v2745_v40  ;;  %v2758_v47 = vld [vmem:[#allocation11 + $0x130] sm:$0xff]  }
 0x247   :  { %v1017_v60 = vmax.f32 %v585_v49, 0.0  ;;  %v1019_v61 = vmax.f32 %v698_v50, 0.0  ;;  %v2759_v48 = vld [vmem:[#allocation11 + $0x1b0] sm:$0xff]  }
 0x248   :  { %v1120_v62 = vpack.c.bf16 %v1016_v54, %v1008_v52  ;;  %v1122_v63 = vpack.c.bf16 %v1018_v55, %v1010_v53  ;;  %v2760_v52 = vld [vmem:[#allocation11 + $0x178] sm:$0xff]  }
 0x249   :  { %v1121_v0 = vpack.c.bf16 %v1017_v60, %v1009_v58  ;;  %v1123_v1 = vpack.c.bf16 %v1019_v61, %v1011_v59  ;;  %v588_v2 = vpop.f32.mrb[12].mxu1  ;;  %v701_v3 = vpop.f32.mrb[28].mxu0  ;;  %2517 = vmatpush3.bf16.msra.mxu1 %v2746_v51  ;;  %2581 = vmatpush3.bf16.msra.mxu0 %v2747_v32  ;;  %v2761_v53 = vld [vmem:[#allocation11 + $0x1f8] sm:$0xff]  }
 0x24a   :  { %v589_v6 = vadd.f32 %v588_v2, %v3179_v19  ;;  %v702_v7 = vadd.f32 %v701_v3, %v3182_v20  ;;  %v590_v8 = vpop.f32.mrb[13].mxu1  ;;  %v703_v9 = vpop.f32.mrb[29].mxu0  ;;  %2518 = vmatprep.subr.bf16.mxu1 %v2748_v56  ;;  %2582 = vmatprep.subr.bf16.mxu0 %v2749_v57 }
 0x24b   :  { %v591_v12 = vadd.f32 %v590_v8, %v3185_v21  ;;  %v704_v13 = vadd.f32 %v703_v9, %v3188_v22  ;;  %v592_v27 = vpop.f32.mrb[14].mxu1  ;;  %v705_v15 = vpop.f32.mrb[30].mxu0  ;;  %1728 = vmatprep.mubr.bf16.mxu1 %v1121_v0  ;;  %1825 = vmatprep.mubr.bf16.mxu0 %v1123_v1  ;;  %v2762_v0 = vld [vmem:[#allocation11 + $0x138] sm:$0xff]  }
 0x24c   :  { %v593_v17 = vadd.f32 %v592_v27, %v3179_v19  ;;  %v706_v18 = vadd.f32 %v705_v15, %v3182_v20  ;;  %v594_v23 = vpop.f32.mrb[15].mxu1  ;;  %v707_v24 = vpop.f32.mrb[31].mxu0  ;;  %1729 = vmatmul.mubr.bf16.gmra.mrb[88].mxu1 %v1120_v62  ;;  %1826 = vmatmul.mubr.bf16.gmra.mrb[72].mxu0 %v1122_v63  ;;  %v1024_v30 = vmax.f32 %v589_v6, 0.0  ;;  %v1026_v31 = vmax.f32 %v702_v7, 0.0  ;;  %v2763_v1 = vld [vmem:[#allocation11 + $0x1b8] sm:$0xff]  }
 0x24d   :  { %v595_v25 = vadd.f32 %v594_v23, %v3185_v21  ;;  %v708_v26 = vadd.f32 %v707_v24, %v3188_v22  ;;  %2519 = vmatpush3.bf16.msra.mxu1 %v2750_v4  ;;  %2583 = vmatpush3.bf16.msra.mxu0 %v2751_v5  ;;  %v1025_v37 = vmax.f32 %v591_v12, 0.0  ;;  %v1027_v38 = vmax.f32 %v704_v13, 0.0 }
 0x24e   :  { %v1032_v33 = vmax.f32 %v593_v17, 0.0  ;;  %v1034_v34 = vmax.f32 %v706_v18, 0.0  ;;  %2520 = vmatprep.subr.bf16.mxu1 %v2752_v10  ;;  %2584 = vmatprep.subr.bf16.mxu0 %v2753_v11 }
 0x24f   :  { %v1033_v39 = vmax.f32 %v595_v25, 0.0  ;;  %v1035_v40 = vmax.f32 %v708_v26, 0.0 }
 0x250   :  { %v1128_v41 = vpack.c.bf16 %v1032_v33, %v1024_v30  ;;  %v1130_v42 = vpack.c.bf16 %v1034_v34, %v1026_v31 }
 0x251   :  { %v1129_v43 = vpack.c.bf16 %v1033_v39, %v1025_v37  ;;  %v1131_v44 = vpack.c.bf16 %v1035_v40, %v1027_v38  ;;  %v598_v45 = vpop.f32.mrb[16].mxu1  ;;  %v711_v46 = vpop.f32.mrb[32].mxu0  ;;  %2521 = vmatpush3.bf16.msra.mxu1 %v2754_v28  ;;  %2585 = vmatpush3.bf16.msra.mxu0 %v2755_v29 }
 0x252   :  { %v599_v49 = vadd.f32 %v598_v45, %v3179_v19  ;;  %v712_v50 = vadd.f32 %v711_v46, %v3182_v20  ;;  %v600_v51 = vpop.f32.mrb[17].mxu1  ;;  %v713_v32 = vpop.f32.mrb[33].mxu0  ;;  %2522 = vmatprep.subr.bf16.mxu1 %v2756_v35  ;;  %2586 = vmatprep.subr.bf16.mxu0 %v2757_v36 }
 0x253   :  { %v601_v54 = vadd.f32 %v600_v51, %v3185_v21  ;;  %v714_v55 = vadd.f32 %v713_v32, %v3188_v22  ;;  %v602_v56 = vpop.f32.mrb[18].mxu1  ;;  %v715_v57 = vpop.f32.mrb[34].mxu0  ;;  %1736 = vmatprep.mubr.bf16.mxu1 %v1129_v43  ;;  %1833 = vmatprep.mubr.bf16.mxu0 %v1131_v44 }
 0x254   :  { %v603_v58 = vadd.f32 %v602_v56, %v3179_v19  ;;  %v716_v59 = vadd.f32 %v715_v57, %v3182_v20  ;;  %v604_v60 = vpop.f32.mrb[19].mxu1  ;;  %v717_v61 = vpop.f32.mrb[35].mxu0  ;;  %1737 = vmatmul.mubr.bf16.gmra.mrb[92].mxu1 %v1128_v41  ;;  %1834 = vmatmul.mubr.bf16.gmra.mrb[76].mxu0 %v1130_v42  ;;  %v1040_v2 = vmax.f32 %v599_v49, 0.0  ;;  %v1042_v3 = vmax.f32 %v712_v50, 0.0 }
 0x255   :  { %v605_v62 = vadd.f32 %v604_v60, %v3185_v21  ;;  %v718_v63 = vadd.f32 %v717_v61, %v3188_v22  ;;  %2523 = vmatpush3.bf16.msra.mxu1 %v2758_v47  ;;  %2587 = vmatpush3.bf16.msra.mxu0 %v2759_v48  ;;  %v1041_v6 = vmax.f32 %v601_v54, 0.0  ;;  %v1043_v7 = vmax.f32 %v714_v55, 0.0 }
 0x256   :  { %v1048_v4 = vmax.f32 %v603_v58, 0.0  ;;  %v1050_v5 = vmax.f32 %v716_v59, 0.0  ;;  %2524 = vmatprep.subr.bf16.mxu1 %v2760_v52  ;;  %2588 = vmatprep.subr.bf16.mxu0 %v2761_v53 }
 0x257   :  { %v1049_v8 = vmax.f32 %v605_v62, 0.0  ;;  %v1051_v9 = vmax.f32 %v718_v63, 0.0 }
 0x258   :  { %v1136_v10 = vpack.c.bf16 %v1048_v4, %v1040_v2  ;;  %v1138_v11 = vpack.c.bf16 %v1050_v5, %v1042_v3 }
 0x259   :  { %v1137_v12 = vpack.c.bf16 %v1049_v8, %v1041_v6  ;;  %v1139_v13 = vpack.c.bf16 %v1051_v9, %v1043_v7  ;;  %v608_v27 = vpop.f32.mrb[20].mxu1  ;;  %v721_v15 = vpop.f32.mrb[36].mxu0  ;;  %2525 = vmatpush3.bf16.msra.mxu1 %v2762_v0  ;;  %2589 = vmatpush3.bf16.msra.mxu0 %v2763_v1  ;;  %v438_v0 = vsub.s32 4, %v3170_v14 }
 0x25a   :  { %v609_v17 = vadd.f32 %v608_v27, %v3179_v19  ;;  %v722_v18 = vadd.f32 %v721_v15, %v3182_v20  ;;  %v610_v23 = vpop.f32.mrb[21].mxu1  ;;  %v723_v24 = vpop.f32.mrb[37].mxu0 }
 0x25b   :  { %v611_v25 = vadd.f32 %v610_v23, %v3185_v21  ;;  %v724_v26 = vadd.f32 %v723_v24, %v3188_v22  ;;  %v612_v28 = vpop.f32.mrb[22].mxu1  ;;  %v725_v29 = vpop.f32.mrb[38].mxu0  ;;  %1744 = vmatprep.mubr.bf16.mxu1 %v1137_v12  ;;  %1841 = vmatprep.mubr.bf16.mxu0 %v1139_v13 }
 0x25c   :  { %v613_v30 = vadd.f32 %v612_v28, %v3179_v19  ;;  %v726_v31 = vadd.f32 %v725_v29, %v3182_v20  ;;  %v614_v33 = vpop.f32.mrb[23].mxu1  ;;  %v727_v34 = vpop.f32.mrb[39].mxu0  ;;  %1745 = vmatmul.mubr.bf16.gmra.mrb[96].mxu1 %v1136_v10  ;;  %1842 = vmatmul.mubr.bf16.gmra.mrb[80].mxu0 %v1138_v11  ;;  %v1056_v37 = vmax.f32 %v609_v17, 0.0  ;;  %v1058_v38 = vmax.f32 %v722_v18, 0.0 }
 0x25d   :  { %v615_v35 = vadd.f32 %v614_v33, %v3185_v21  ;;  %v728_v36 = vadd.f32 %v727_v34, %v3188_v22  ;;  %v1057_v41 = vmax.f32 %v611_v25, 0.0  ;;  %v1059_v42 = vmax.f32 %v724_v26, 0.0 }
 0x25e   :  { %v1064_v39 = vmax.f32 %v613_v30, 0.0  ;;  %v1066_v40 = vmax.f32 %v726_v31, 0.0  ;;  %v446_v11 = vsub.s32 6, %v3170_v14  ;;  %v442_v17 = vsub.s32 5, %v3170_v14 }
 0x25f   :  { %v1065_v43 = vmax.f32 %v615_v35, 0.0  ;;  %v1067_v44 = vmax.f32 %v728_v36, 0.0  ;;  %v450_v18 = vsub.s32 7, %v3170_v14  ;;  %v3255_v33 = vrot.slane %v3174_v16, %v438_v0 }
 0x260   :  { %v1144_v45 = vpack.c.bf16 %v1064_v39, %v1056_v37  ;;  %v1146_v46 = vpack.c.bf16 %v1066_v40, %v1058_v38  ;;  %v3260_v37 = vrot.slane %v3174_v16, %v446_v11  ;;  %v3265_v40 = vrot.slane %v3174_v16, %v442_v17 }
 0x261   :  { %v1145_v47 = vpack.c.bf16 %v1065_v43, %v1057_v41  ;;  %v1147_v48 = vpack.c.bf16 %v1067_v44, %v1059_v42  ;;  %v618_v49 = vpop.f32.mrb[24].mxu1  ;;  %v731_v50 = vpop.f32.mrb[40].mxu0  ;;  %v3268_v41 = vrot.slane %v3174_v16, %v450_v18 }
 0x262   :  { %v619_v51 = vadd.f32 %v618_v49, %v3179_v19  ;;  %v732_v32 = vadd.f32 %v731_v50, %v3182_v20  ;;  %v620_v52 = vpop.f32.mrb[25].mxu1  ;;  %v733_v53 = vpop.f32.mrb[41].mxu0 }
 0x263   :  { %v621_v54 = vadd.f32 %v620_v52, %v3185_v21  ;;  %v734_v55 = vadd.f32 %v733_v53, %v3188_v22  ;;  %v622_v56 = vpop.f32.mrb[26].mxu1  ;;  %v735_v57 = vpop.f32.mrb[42].mxu0  ;;  %1752 = vmatprep.mubr.bf16.mxu1 %v1145_v47  ;;  %1849 = vmatprep.mubr.bf16.mxu0 %v1147_v48 }
 0x264   :  { %v623_v58 = vadd.f32 %v622_v56, %v3179_v19  ;;  %v736_v59 = vadd.f32 %v735_v57, %v3182_v20  ;;  %v624_v60 = vpop.f32.mrb[27].mxu1  ;;  %v737_v61 = vpop.f32.mrb[43].mxu0  ;;  %1753 = vmatmul.mubr.bf16.gmra.mrb[100].mxu1 %v1144_v45  ;;  %1850 = vmatmul.mubr.bf16.gmra.mrb[84].mxu0 %v1146_v46  ;;  %v1072_v1 = vmax.f32 %v619_v51, 0.0  ;;  %v1074_v2 = vmax.f32 %v732_v32, 0.0 }
 0x265   :  { %v625_v62 = vadd.f32 %v624_v60, %v3185_v21  ;;  %v738_v63 = vadd.f32 %v737_v61, %v3188_v22  ;;  %v1073_v5 = vmax.f32 %v621_v54, 0.0  ;;  %v1075_v6 = vmax.f32 %v734_v55, 0.0 }
 0x266   :  { %v1080_v3 = vmax.f32 %v623_v58, 0.0  ;;  %v1082_v4 = vmax.f32 %v736_v59, 0.0 }
 0x267   :  { %v1081_v7 = vmax.f32 %v625_v62, 0.0  ;;  %v1083_v8 = vmax.f32 %v738_v63, 0.0 }
 0x268   :  { %v1152_v9 = vpack.c.bf16 %v1080_v3, %v1072_v1  ;;  %v1154_v10 = vpack.c.bf16 %v1082_v4, %v1074_v2 }
 0x269   :  { %v1153_v12 = vpack.c.bf16 %v1081_v7, %v1073_v5  ;;  %v1155_v13 = vpack.c.bf16 %v1083_v8, %v1075_v6  ;;  %v628_v27 = vpop.f32.mrb[28].mxu1  ;;  %v741_v15 = vpop.f32.mrb[44].mxu0 }
 0x26a   :  { %v629_v23 = vadd.f32 %v628_v27, %v3179_v19  ;;  %v742_v24 = vadd.f32 %v741_v15, %v3182_v20  ;;  %v630_v25 = vpop.f32.mrb[29].mxu1  ;;  %v743_v26 = vpop.f32.mrb[45].mxu0 }
 0x26b   :  { %v631_v28 = vadd.f32 %v630_v25, %v3185_v21  ;;  %v744_v29 = vadd.f32 %v743_v26, %v3188_v22  ;;  %v632_v30 = vpop.f32.mrb[30].mxu1  ;;  %v745_v31 = vpop.f32.mrb[46].mxu0  ;;  %1760 = vmatprep.mubr.bf16.mxu1 %v1153_v12  ;;  %1857 = vmatprep.mubr.bf16.mxu0 %v1155_v13 }
 0x26c   :  { %v633_v34 = vadd.f32 %v632_v30, %v3179_v19  ;;  %v746_v14 = vadd.f32 %v745_v31, %v3182_v20  ;;  %v634_v35 = vpop.f32.mrb[31].mxu1  ;;  %v747_v36 = vpop.f32.mrb[47].mxu0  ;;  %1761 = vmatmul.mubr.bf16.gmra.mrb[104].mxu1 %v1152_v9  ;;  %1858 = vmatmul.mubr.bf16.gmra.mrb[88].mxu0 %v1154_v10  ;;  %v1088_v19 = vmax.f32 %v629_v23, 0.0  ;;  %v1090_v42 = vmax.f32 %v742_v24, 0.0 }
 0x26d   :  { %v635_v38 = vadd.f32 %v634_v35, %v3185_v21  ;;  %v748_v39 = vadd.f32 %v747_v36, %v3188_v22  ;;  %v1089_v44 = vmax.f32 %v631_v28, 0.0  ;;  %v1091_v45 = vmax.f32 %v744_v29, 0.0 }
 0x26e   :  { %v1096_v20 = vmax.f32 %v633_v34, 0.0  ;;  %v1098_v43 = vmax.f32 %v746_v14, 0.0 }
 0x26f   :  { %v1097_v46 = vmax.f32 %v635_v38, 0.0  ;;  %v1099_v47 = vmax.f32 %v748_v39, 0.0 }
 0x270   :  { %v1160_v48 = vpack.c.bf16 %v1096_v20, %v1088_v19  ;;  %v1162_v49 = vpack.c.bf16 %v1098_v43, %v1090_v42 }
 0x271   :  { %v1161_v50 = vpack.c.bf16 %v1097_v46, %v1089_v44  ;;  %v1163_v21 = vpack.c.bf16 %v1099_v47, %v1091_v45  ;;  %v784_v51 = vpop.f32.mrb[32].mxu1  ;;  %v897_v22 = vpop.f32.mrb[48].mxu0 }
 0x272   :  { %v785_v32 = vadd.f32 %v784_v51, %v3255_v33  ;;  %v898_v52 = vadd.f32 %v897_v22, %v3260_v37  ;;  %v786_v16 = vpop.f32.mrb[33].mxu1  ;;  %v899_v53 = vpop.f32.mrb[49].mxu0 }
 0x273   :  { %v787_v54 = vadd.f32 %v786_v16, %v3265_v40  ;;  %v900_v55 = vadd.f32 %v899_v53, %v3268_v41  ;;  %v788_v56 = vpop.f32.mrb[34].mxu1  ;;  %v901_v57 = vpop.f32.mrb[50].mxu0  ;;  %1768 = vmatprep.mubr.bf16.mxu1 %v1161_v50  ;;  %1865 = vmatprep.mubr.bf16.mxu0 %v1163_v21 }
 0x274   :  { %v789_v58 = vadd.f32 %v788_v56, %v3255_v33  ;;  %v902_v59 = vadd.f32 %v901_v57, %v3260_v37  ;;  %v790_v60 = vpop.f32.mrb[35].mxu1  ;;  %v903_v61 = vpop.f32.mrb[51].mxu0  ;;  %1769 = vmatmul.mubr.bf16.gmra.mrb[108].mxu1 %v1160_v48  ;;  %1866 = vmatmul.mubr.bf16.gmra.mrb[92].mxu0 %v1162_v49  ;;  %v980_v0 = vmax.f32 %v785_v32, 0.0  ;;  %v982_v1 = vmax.f32 %v898_v52, 0.0 }
 0x275   :  { %v791_v62 = vadd.f32 %v790_v60, %v3265_v40  ;;  %v904_v63 = vadd.f32 %v903_v61, %v3268_v41  ;;  %v981_v4 = vmax.f32 %v787_v54, 0.0  ;;  %v983_v5 = vmax.f32 %v900_v55, 0.0 }
 0x276   :  { %v988_v2 = vmax.f32 %v789_v58, 0.0  ;;  %v990_v3 = vmax.f32 %v902_v59, 0.0 }
 0x277   :  { %v989_v6 = vmax.f32 %v791_v62, 0.0  ;;  %v991_v7 = vmax.f32 %v904_v63, 0.0 }
 0x278   :  { %v1108_v8 = vpack.c.bf16 %v988_v2, %v980_v0  ;;  %v1110_v9 = vpack.c.bf16 %v990_v3, %v982_v1 }
 0x279   :  { %v1109_v10 = vpack.c.bf16 %v989_v6, %v981_v4  ;;  %v1111_v11 = vpack.c.bf16 %v991_v7, %v983_v5  ;;  %v794_v12 = vpop.f32.mrb[36].mxu1  ;;  %v907_v13 = vpop.f32.mrb[52].mxu0 }
 0x27a   :  { %v795_v27 = vadd.f32 %v794_v12, %v3255_v33  ;;  %v908_v15 = vadd.f32 %v907_v13, %v3260_v37  ;;  %v796_v17 = vpop.f32.mrb[37].mxu1  ;;  %v909_v18 = vpop.f32.mrb[53].mxu0 }
 0x27b   :  { %v797_v23 = vadd.f32 %v796_v17, %v3265_v40  ;;  %v910_v24 = vadd.f32 %v909_v18, %v3268_v41  ;;  %v798_v25 = vpop.f32.mrb[38].mxu1  ;;  %v911_v26 = vpop.f32.mrb[54].mxu0  ;;  %1906 = vmatprep.mubr.bf16.mxu1 %v1109_v10  ;;  %2003 = vmatprep.mubr.bf16.mxu0 %v1111_v11 }
 0x27c   :  { %v799_v28 = vadd.f32 %v798_v25, %v3255_v33  ;;  %v912_v29 = vadd.f32 %v911_v26, %v3260_v37  ;;  %v800_v30 = vpop.f32.mrb[39].mxu1  ;;  %v913_v31 = vpop.f32.mrb[55].mxu0  ;;  %1907 = vmatmul.mubr.bf16.vlgmr.msra.gmra.mrb[112].mxu1 %v1108_v8  ;;  %2004 = vmatmul.mubr.bf16.vlgmr.msra.gmra.mrb[96].mxu0 %v1110_v9  ;;  %v996_v35 = vmax.f32 %v795_v27, 0.0  ;;  %v998_v36 = vmax.f32 %v908_v15, 0.0 }
 0x27d   :  { %v801_v34 = vadd.f32 %v800_v30, %v3265_v40  ;;  %v914_v14 = vadd.f32 %v913_v31, %v3268_v41  ;;  %v997_v19 = vmax.f32 %v797_v23, 0.0  ;;  %v999_v42 = vmax.f32 %v910_v24, 0.0 }
 0x27e   :  { %v1004_v38 = vmax.f32 %v799_v28, 0.0  ;;  %v1006_v39 = vmax.f32 %v912_v29, 0.0 }
 0x27f   :  { %v1005_v20 = vmax.f32 %v801_v34, 0.0  ;;  %v1007_v43 = vmax.f32 %v914_v14, 0.0 }
 0x280   :  { %v1116_v44 = vpack.c.bf16 %v1004_v38, %v996_v35  ;;  %v1118_v45 = vpack.c.bf16 %v1006_v39, %v998_v36 }
 0x281   :  { %v1117_v46 = vpack.c.bf16 %v1005_v20, %v997_v19  ;;  %v1119_v47 = vpack.c.bf16 %v1007_v43, %v999_v42  ;;  %v804_v48 = vpop.f32.mrb[40].mxu1  ;;  %v917_v49 = vpop.f32.mrb[56].mxu0 }
 0x282   :  { %v805_v50 = vadd.f32 %v804_v48, %v3255_v33  ;;  %v918_v21 = vadd.f32 %v917_v49, %v3260_v37  ;;  %v806_v51 = vpop.f32.mrb[41].mxu1  ;;  %v919_v22 = vpop.f32.mrb[57].mxu0 }
 0x283   :  { %v807_v32 = vadd.f32 %v806_v51, %v3265_v40  ;;  %v920_v52 = vadd.f32 %v919_v22, %v3268_v41  ;;  %v808_v16 = vpop.f32.mrb[42].mxu1  ;;  %v921_v53 = vpop.f32.mrb[58].mxu0  ;;  %1914 = vmatprep.mubr.bf16.mxu1 %v1117_v46  ;;  %2011 = vmatprep.mubr.bf16.mxu0 %v1119_v47 }
 0x284   :  { %v809_v54 = vadd.f32 %v808_v16, %v3255_v33  ;;  %v922_v55 = vadd.f32 %v921_v53, %v3260_v37  ;;  %v810_v56 = vpop.f32.mrb[43].mxu1  ;;  %v923_v57 = vpop.f32.mrb[59].mxu0  ;;  %1915 = vmatmul.mubr.bf16.gmra.mrb[116].mxu1 %v1116_v44  ;;  %2012 = vmatmul.mubr.bf16.gmra.mrb[100].mxu0 %v1118_v45  ;;  %v1012_v60 = vmax.f32 %v805_v50, 0.0  ;;  %v1014_v61 = vmax.f32 %v918_v21, 0.0 }
 0x285   :  { %v811_v58 = vadd.f32 %v810_v56, %v3265_v40  ;;  %v924_v59 = vadd.f32 %v923_v57, %v3268_v41  ;;  %v1013_v0 = vmax.f32 %v807_v32, 0.0  ;;  %v1015_v1 = vmax.f32 %v920_v52, 0.0 }
 0x286   :  { %v1020_v62 = vmax.f32 %v809_v54, 0.0  ;;  %v1022_v63 = vmax.f32 %v922_v55, 0.0 }
 0x287   :  { %v1021_v2 = vmax.f32 %v811_v58, 0.0  ;;  %v1023_v3 = vmax.f32 %v924_v59, 0.0 }
 0x288   :  { %v1124_v4 = vpack.c.bf16 %v1020_v62, %v1012_v60  ;;  %v1126_v5 = vpack.c.bf16 %v1022_v63, %v1014_v61 }
 0x289   :  { %v1125_v6 = vpack.c.bf16 %v1021_v2, %v1013_v0  ;;  %v1127_v7 = vpack.c.bf16 %v1023_v3, %v1015_v1  ;;  %v814_v8 = vpop.f32.mrb[44].mxu1  ;;  %v927_v9 = vpop.f32.mrb[60].mxu0 }
 0x28a   :  { %v815_v10 = vadd.f32 %v814_v8, %v3255_v33  ;;  %v928_v11 = vadd.f32 %v927_v9, %v3260_v37  ;;  %v816_v12 = vpop.f32.mrb[45].mxu1  ;;  %v929_v13 = vpop.f32.mrb[61].mxu0 }
 0x28b   :  { %v817_v27 = vadd.f32 %v816_v12, %v3265_v40  ;;  %v930_v15 = vadd.f32 %v929_v13, %v3268_v41  ;;  %v818_v17 = vpop.f32.mrb[46].mxu1  ;;  %v931_v18 = vpop.f32.mrb[62].mxu0  ;;  %1922 = vmatprep.mubr.bf16.mxu1 %v1125_v6  ;;  %2019 = vmatprep.mubr.bf16.mxu0 %v1127_v7 }
 0x28c   :  { %v819_v23 = vadd.f32 %v818_v17, %v3255_v33  ;;  %v932_v24 = vadd.f32 %v931_v18, %v3260_v37  ;;  %v820_v25 = vpop.f32.mrb[47].mxu1  ;;  %v933_v26 = vpop.f32.mrb[63].mxu0  ;;  %1923 = vmatmul.mubr.bf16.gmra.mrb[120].mxu1 %v1124_v4  ;;  %2020 = vmatmul.mubr.bf16.gmra.mrb[104].mxu0 %v1126_v5  ;;  %v1028_v30 = vmax.f32 %v815_v10, 0.0  ;;  %v1030_v31 = vmax.f32 %v928_v11, 0.0 }
 0x28d   :  { %v821_v28 = vadd.f32 %v820_v25, %v3265_v40  ;;  %v934_v29 = vadd.f32 %v933_v26, %v3268_v41  ;;  %v1029_v35 = vmax.f32 %v817_v27, 0.0  ;;  %v1031_v36 = vmax.f32 %v930_v15, 0.0 }
 0x28e   :  { %v1036_v34 = vmax.f32 %v819_v23, 0.0  ;;  %v1038_v14 = vmax.f32 %v932_v24, 0.0 }
 0x28f   :  { %v1037_v38 = vmax.f32 %v821_v28, 0.0  ;;  %v1039_v39 = vmax.f32 %v934_v29, 0.0 }
 0x290   :  { %v1132_v19 = vpack.c.bf16 %v1036_v34, %v1028_v30  ;;  %v1134_v42 = vpack.c.bf16 %v1038_v14, %v1030_v31 }
 0x291   :  { %v1133_v20 = vpack.c.bf16 %v1037_v38, %v1029_v35  ;;  %v1135_v43 = vpack.c.bf16 %v1039_v39, %v1031_v36  ;;  %v824_v44 = vpop.f32.mrb[48].mxu1 }
 0x292   :  { %v825_v45 = vadd.f32 %v824_v44, %v3255_v33  ;;  %v826_v46 = vpop.f32.mrb[49].mxu1 }
 0x293   :  { %v827_v47 = vadd.f32 %v826_v46, %v3265_v40  ;;  %v828_v48 = vpop.f32.mrb[50].mxu1  ;;  %1930 = vmatprep.mubr.bf16.mxu1 %v1133_v20  ;;  %2027 = vmatprep.mubr.bf16.mxu0 %v1135_v43 }
 0x294   :  { %v829_v49 = vadd.f32 %v828_v48, %v3255_v33  ;;  %v830_v50 = vpop.f32.mrb[51].mxu1  ;;  %1931 = vmatmul.mubr.bf16.gmra.mrb[124].mxu1 %v1132_v19  ;;  %2028 = vmatmul.mubr.bf16.gmra.mrb[108].mxu0 %v1134_v42  ;;  %v1044_v51 = vmax.f32 %v825_v45, 0.0 }
 0x295   :  { %v831_v21 = vadd.f32 %v830_v50, %v3265_v40  ;;  %v1045_v32 = vmax.f32 %v827_v47, 0.0 }
 0x296   :  { %v1052_v22 = vmax.f32 %v829_v49, 0.0 }
 0x297   :  { %v1053_v52 = vmax.f32 %v831_v21, 0.0 }
 0x298   :  { %v1140_v16 = vpack.c.bf16 %v1052_v22, %v1044_v51 }
 0x299   :  { %v1141_v53 = vpack.c.bf16 %v1053_v52, %v1045_v32  ;;  %v834_v54 = vpop.f32.mrb[52].mxu1 }
 0x29a   :  { %v835_v55 = vadd.f32 %v834_v54, %v3255_v33  ;;  %v836_v56 = vpop.f32.mrb[53].mxu1 }
 0x29b   :  { %v837_v57 = vadd.f32 %v836_v56, %v3265_v40  ;;  %v838_v58 = vpop.f32.mrb[54].mxu1  ;;  %1938 = vmatprep.mubr.bf16.mxu1 %v1141_v53 }
 0x29c   :  { %v839_v59 = vadd.f32 %v838_v58, %v3255_v33  ;;  %v840_v60 = vpop.f32.mrb[55].mxu1  ;;  %1939 = vmatmul.mubr.bf16.gmra.mrb[128].mxu1 %v1140_v16  ;;  %v1060_v62 = vmax.f32 %v835_v55, 0.0 }
 0x29d   :  { %v841_v61 = vadd.f32 %v840_v60, %v3265_v40  ;;  %v1061_v0 = vmax.f32 %v837_v57, 0.0 }
 0x29e   :  { %v1068_v63 = vmax.f32 %v839_v59, 0.0 }
 0x29f   :  { %v1069_v1 = vmax.f32 %v841_v61, 0.0 }
 0x2a0   :  { %v1148_v2 = vpack.c.bf16 %v1068_v63, %v1060_v62 }
 0x2a1   :  { %v1149_v3 = vpack.c.bf16 %v1069_v1, %v1061_v0  ;;  %v844_v4 = vpop.f32.mrb[56].mxu1 }
 0x2a2   :  { %v845_v5 = vadd.f32 %v844_v4, %v3255_v33  ;;  %v846_v6 = vpop.f32.mrb[57].mxu1 }
 0x2a3   :  { %v847_v7 = vadd.f32 %v846_v6, %v3265_v40  ;;  %v848_v8 = vpop.f32.mrb[58].mxu1  ;;  %1946 = vmatprep.mubr.bf16.mxu1 %v1149_v3 }
 0x2a4   :  { %v849_v9 = vadd.f32 %v848_v8, %v3255_v33  ;;  %v850_v10 = vpop.f32.mrb[59].mxu1  ;;  %1947 = vmatmul.mubr.bf16.gmra.mrb[132].mxu1 %v1148_v2  ;;  %v1076_v12 = vmax.f32 %v845_v5, 0.0 }
 0x2a5   :  { %v851_v11 = vadd.f32 %v850_v10, %v3265_v40  ;;  %v1077_v27 = vmax.f32 %v847_v7, 0.0 }
 0x2a6   :  { %v1084_v13 = vmax.f32 %v849_v9, 0.0 }
 0x2a7   :  { %v1085_v15 = vmax.f32 %v851_v11, 0.0 }
 0x2a8   :  { %v1156_v17 = vpack.c.bf16 %v1084_v13, %v1076_v12 }
 0x2a9   :  { %v1157_v18 = vpack.c.bf16 %v1085_v15, %v1077_v27  ;;  %v854_v23 = vpop.f32.mrb[60].mxu1 }
 0x2aa   :  { %v855_v24 = vadd.f32 %v854_v23, %v3255_v33  ;;  %v856_v25 = vpop.f32.mrb[61].mxu1 }
 0x2ab   :  { %v857_v26 = vadd.f32 %v856_v25, %v3265_v40  ;;  %v858_v28 = vpop.f32.mrb[62].mxu1  ;;  %1954 = vmatprep.mubr.bf16.mxu1 %v1157_v18 }
 0x2ac   :  { %v859_v29 = vadd.f32 %v858_v28, %v3255_v33  ;;  %v860_v30 = vpop.f32.mrb[63].mxu1  ;;  %1955 = vmatmul.mubr.bf16.gmra.mrb[136].mxu1 %v1156_v17  ;;  %v1092_v34 = vmax.f32 %v855_v24, 0.0 }
 0x2ad   :  { %v861_v31 = vadd.f32 %v860_v30, %v3265_v40  ;;  %v1093_v35 = vmax.f32 %v857_v26, 0.0 }
 0x2ae   :  { %v1100_v14 = vmax.f32 %v859_v29, 0.0 }
 0x2af   :  { %v1101_v36 = vmax.f32 %v861_v31, 0.0 }
 0x2b0   :  { %v1164_v38 = vpack.c.bf16 %v1100_v14, %v1092_v34 }
 0x2b1   :  { %v1165_v39 = vpack.c.bf16 %v1101_v36, %v1093_v35  ;;  %v937_v19 = vpop.f32.mrb[64].mxu1 }
 0x2b2   :  { %v938_v42 = vadd.f32 %v937_v19, %v3260_v37  ;;  %v939_v20 = vpop.f32.mrb[65].mxu1 }
 0x2b3   :  { %v940_v43 = vadd.f32 %v939_v20, %v3268_v41  ;;  %v941_v44 = vpop.f32.mrb[66].mxu1  ;;  %1962 = vmatprep.mubr.bf16.mxu1 %v1165_v39 }
 0x2b4   :  { %v942_v33 = vadd.f32 %v941_v44, %v3260_v37  ;;  %v943_v45 = vpop.f32.mrb[67].mxu1  ;;  %1963 = vmatmul.mubr.bf16.gmra.mrb[140].mxu1 %v1164_v38  ;;  %v1046_v46 = vmax.f32 %v938_v42, 0.0 }
 0x2b5   :  { %v944_v40 = vadd.f32 %v943_v45, %v3268_v41  ;;  %v1047_v48 = vmax.f32 %v940_v43, 0.0 }
 0x2b6   :  { %v1054_v47 = vmax.f32 %v942_v33, 0.0 }
 0x2b7   :  { %v1055_v49 = vmax.f32 %v944_v40, 0.0 }
 0x2b8   :  { %v1142_v50 = vpack.c.bf16 %v1054_v47, %v1046_v46 }
 0x2b9   :  { %v1143_v21 = vpack.c.bf16 %v1055_v49, %v1047_v48  ;;  %v947_v51 = vpop.f32.mrb[68].mxu1 }
 0x2ba   :  { %v948_v22 = vadd.f32 %v947_v51, %v3260_v37  ;;  %v949_v32 = vpop.f32.mrb[69].mxu1 }
 0x2bb   :  { %v950_v52 = vadd.f32 %v949_v32, %v3268_v41  ;;  %v951_v16 = vpop.f32.mrb[70].mxu1  ;;  %2035 = vmatprep.mubr.bf16.mxu0 %v1143_v21 }
 0x2bc   :  { %v952_v53 = vadd.f32 %v951_v16, %v3260_v37  ;;  %v953_v54 = vpop.f32.mrb[71].mxu1  ;;  %2036 = vmatmul.mubr.bf16.gmra.mrb[112].mxu0 %v1142_v50  ;;  %v1062_v56 = vmax.f32 %v948_v22, 0.0 }
 0x2bd   :  { %v954_v55 = vadd.f32 %v953_v54, %v3268_v41  ;;  %v1063_v58 = vmax.f32 %v950_v52, 0.0 }
 0x2be   :  { %v1070_v57 = vmax.f32 %v952_v53, 0.0 }
 0x2bf   :  { %v1071_v59 = vmax.f32 %v954_v55, 0.0 }
 0x2c0   :  { %v1150_v60 = vpack.c.bf16 %v1070_v57, %v1062_v56 }
 0x2c1   :  { %v1151_v61 = vpack.c.bf16 %v1071_v59, %v1063_v58  ;;  %v957_v62 = vpop.f32.mrb[72].mxu1 }
 0x2c2   :  { %v958_v63 = vadd.f32 %v957_v62, %v3260_v37  ;;  %v959_v0 = vpop.f32.mrb[73].mxu1 }
 0x2c3   :  { %v960_v1 = vadd.f32 %v959_v0, %v3268_v41  ;;  %v961_v2 = vpop.f32.mrb[74].mxu1  ;;  %2043 = vmatprep.mubr.bf16.mxu0 %v1151_v61 }
 0x2c4   :  { %v962_v3 = vadd.f32 %v961_v2, %v3260_v37  ;;  %v963_v4 = vpop.f32.mrb[75].mxu1  ;;  %2044 = vmatmul.mubr.bf16.gmra.mrb[116].mxu0 %v1150_v60  ;;  %v1078_v6 = vmax.f32 %v958_v63, 0.0 }
 0x2c5   :  { %v964_v5 = vadd.f32 %v963_v4, %v3268_v41  ;;  %v1079_v8 = vmax.f32 %v960_v1, 0.0 }
 0x2c6   :  { %v1086_v7 = vmax.f32 %v962_v3, 0.0 }
 0x2c7   :  { %v1087_v9 = vmax.f32 %v964_v5, 0.0 }
 0x2c8   :  { %v1158_v10 = vpack.c.bf16 %v1086_v7, %v1078_v6 }
 0x2c9   :  { %v1159_v11 = vpack.c.bf16 %v1087_v9, %v1079_v8  ;;  %v967_v12 = vpop.f32.mrb[76].mxu1 }
 0x2ca   :  { %v968_v13 = vadd.f32 %v967_v12, %v3260_v37  ;;  %v969_v27 = vpop.f32.mrb[77].mxu1 }
 0x2cb   :  { %v970_v15 = vadd.f32 %v969_v27, %v3268_v41  ;;  %v971_v17 = vpop.f32.mrb[78].mxu1  ;;  %2051 = vmatprep.mubr.bf16.mxu0 %v1159_v11 }
 0x2cc   :  { %v972_v18 = vadd.f32 %v971_v17, %v3260_v37  ;;  %v973_v23 = vpop.f32.mrb[79].mxu1  ;;  %2052 = vmatmul.mubr.bf16.gmra.mrb[120].mxu0 %v1158_v10  ;;  %v1094_v25 = vmax.f32 %v968_v13, 0.0 }
 0x2cd   :  { %v974_v24 = vadd.f32 %v973_v23, %v3268_v41  ;;  %v1095_v28 = vmax.f32 %v970_v15, 0.0 }
 0x2ce   :  { %v1102_v26 = vmax.f32 %v972_v18, 0.0 }
 0x2cf   :  { %v1103_v29 = vmax.f32 %v974_v24, 0.0 }
 0x2d0   :  { %v1166_v30 = vpack.c.bf16 %v1102_v26, %v1094_v25 }
 0x2d1   :  { %v1167_v31 = vpack.c.bf16 %v1103_v29, %v1095_v28 }
 0x2d3   :  { %2059 = vmatprep.mubr.bf16.mxu0 %v1167_v31 }
 0x2d4   :  { %2060 = vmatmul.mubr.bf16.gmra.mrb[124].mxu0 %v1166_v30 }
 0x30f   :  { %v2398_v34 = vpop.f32.mrb[80].mxu1  ;;  %v2462_v14 = vpop.f32.mrb[64].mxu0 }
 0x310   :  { %v2399_v35 = vpop.f32.mrb[81].mxu1  ;;  %v2463_v36 = vpop.f32.mrb[65].mxu0 }
 0x311   :  { %v2400_v38 = vadd.f32 %v2399_v35, %v2398_v34  ;;  %v2464_v39 = vadd.f32 %v2463_v36, %v2462_v14  ;;  %v2401_v19 = vpop.f32.mrb[82].mxu1  ;;  %v2465_v37 = vpop.f32.mrb[66].mxu0 }
 0x312   :  { %v2402_v42 = vpop.f32.mrb[83].mxu1  ;;  %v2466_v20 = vpop.f32.mrb[67].mxu0 }
 0x313   :  { %v3334_v43 = vadd.f32 %v2464_v39, %v2400_v38  ;;  %v2403_v41 = vadd.f32 %v2402_v42, %v2401_v19  ;;  %v2467_v44 = vadd.f32 %v2466_v20, %v2465_v37 }
 0x315   :  { %v3336_v33 = vadd.f32 %v2467_v44, %v2403_v41 }
 0x317   :  { %v2404_v45 = vpop.f32.mrb[84].mxu1  ;;  %v2468_v40 = vpop.f32.mrb[68].mxu0 }
 0x318   :  { %v2405_v46 = vpop.f32.mrb[85].mxu1  ;;  %v2469_v47 = vpop.f32.mrb[69].mxu0 }
 0x319   :  { %v2406_v48 = vadd.f32 %v2405_v46, %v2404_v45  ;;  %v2470_v49 = vadd.f32 %v2469_v47, %v2468_v40  ;;  %v2407_v50 = vpop.f32.mrb[86].mxu1  ;;  %v2471_v21 = vpop.f32.mrb[70].mxu0 }
 0x31a   :  { %v2408_v51 = vpop.f32.mrb[87].mxu1  ;;  %v2472_v22 = vpop.f32.mrb[71].mxu0 }
 0x31b   :  { %v3338_v32 = vadd.f32 %v2470_v49, %v2406_v48  ;;  %v2409_v52 = vadd.f32 %v2408_v51, %v2407_v50  ;;  %v2473_v16 = vadd.f32 %v2472_v22, %v2471_v21 }
 0x31d   :  { %v3340_v53 = vadd.f32 %v2473_v16, %v2409_v52 }
 0x31f   :  { %v2410_v54 = vpop.f32.mrb[88].mxu1  ;;  %v2474_v55 = vpop.f32.mrb[72].mxu0 }
 0x320   :  { %v2411_v56 = vpop.f32.mrb[89].mxu1  ;;  %v2475_v57 = vpop.f32.mrb[73].mxu0 }
 0x321   :  { %v2412_v58 = vadd.f32 %v2411_v56, %v2410_v54  ;;  %v2476_v59 = vadd.f32 %v2475_v57, %v2474_v55  ;;  %v2413_v60 = vpop.f32.mrb[90].mxu1  ;;  %v2477_v61 = vpop.f32.mrb[74].mxu0 }
 0x322   :  { %v2414_v62 = vpop.f32.mrb[91].mxu1  ;;  %v2478_v63 = vpop.f32.mrb[75].mxu0 }
 0x323   :  { %v3342_v0 = vadd.f32 %v2476_v59, %v2412_v58  ;;  %v2415_v1 = vadd.f32 %v2414_v62, %v2413_v60  ;;  %v2479_v2 = vadd.f32 %v2478_v63, %v2477_v61 }
 0x325   :  { %v3344_v3 = vadd.f32 %v2479_v2, %v2415_v1 }
 0x327   :  { %v2416_v4 = vpop.f32.mrb[92].mxu1  ;;  %v2480_v5 = vpop.f32.mrb[76].mxu0 }
 0x328   :  { %v2417_v6 = vpop.f32.mrb[93].mxu1  ;;  %v2481_v7 = vpop.f32.mrb[77].mxu0 }
 0x329   :  { %v2418_v8 = vadd.f32 %v2417_v6, %v2416_v4  ;;  %v2482_v9 = vadd.f32 %v2481_v7, %v2480_v5  ;;  %v2419_v10 = vpop.f32.mrb[94].mxu1  ;;  %v2483_v11 = vpop.f32.mrb[78].mxu0 }
 0x32a   :  { %v2420_v12 = vpop.f32.mrb[95].mxu1  ;;  %v2484_v13 = vpop.f32.mrb[79].mxu0 }
 0x32b   :  { %v3346_v27 = vadd.f32 %v2482_v9, %v2418_v8  ;;  %v2421_v15 = vadd.f32 %v2420_v12, %v2419_v10  ;;  %v2485_v17 = vadd.f32 %v2484_v13, %v2483_v11 }
 0x32d   :  { %v3348_v18 = vadd.f32 %v2485_v17, %v2421_v15 }
 0x32f   :  { %v2422_v23 = vpop.f32.mrb[96].mxu1  ;;  %v2486_v24 = vpop.f32.mrb[80].mxu0 }
 0x330   :  { %v2423_v25 = vpop.f32.mrb[97].mxu1  ;;  %v2487_v26 = vpop.f32.mrb[81].mxu0 }
 0x331   :  { %v2424_v28 = vadd.f32 %v2423_v25, %v2422_v23  ;;  %v2488_v29 = vadd.f32 %v2487_v26, %v2486_v24  ;;  %v2425_v30 = vpop.f32.mrb[98].mxu1  ;;  %v2489_v31 = vpop.f32.mrb[82].mxu0 }
 0x332   :  { %v2426_v34 = vpop.f32.mrb[99].mxu1  ;;  %v2490_v14 = vpop.f32.mrb[83].mxu0 }
 0x333   :  { %v3350_v35 = vadd.f32 %v2488_v29, %v2424_v28  ;;  %v2427_v36 = vadd.f32 %v2426_v34, %v2425_v30  ;;  %v2491_v38 = vadd.f32 %v2490_v14, %v2489_v31 }
 0x335   :  { %v3352_v39 = vadd.f32 %v2491_v38, %v2427_v36 }
 0x337   :  { %v2428_v19 = vpop.f32.mrb[100].mxu1  ;;  %v2492_v37 = vpop.f32.mrb[84].mxu0 }
 0x338   :  { %v2429_v42 = vpop.f32.mrb[101].mxu1  ;;  %v2493_v20 = vpop.f32.mrb[85].mxu0 }
 0x339   :  { %v2430_v41 = vadd.f32 %v2429_v42, %v2428_v19  ;;  %v2494_v44 = vadd.f32 %v2493_v20, %v2492_v37  ;;  %v2431_v45 = vpop.f32.mrb[102].mxu1  ;;  %v2495_v40 = vpop.f32.mrb[86].mxu0 }
 0x33a   :  { %v2432_v46 = vpop.f32.mrb[103].mxu1  ;;  %v2496_v47 = vpop.f32.mrb[87].mxu0 }
 0x33b   :  { %v3354_v48 = vadd.f32 %v2494_v44, %v2430_v41  ;;  %v2433_v49 = vadd.f32 %v2432_v46, %v2431_v45  ;;  %v2497_v50 = vadd.f32 %v2496_v47, %v2495_v40 }
 0x33d   :  { %v3356_v21 = vadd.f32 %v2497_v50, %v2433_v49 }
 0x33f   :  { %v2434_v51 = vpop.f32.mrb[104].mxu1  ;;  %v2498_v22 = vpop.f32.mrb[88].mxu0 }
 0x340   :  { %v2435_v52 = vpop.f32.mrb[105].mxu1  ;;  %v2499_v16 = vpop.f32.mrb[89].mxu0 }
 0x341   :  { %v2436_v54 = vadd.f32 %v2435_v52, %v2434_v51  ;;  %v2500_v55 = vadd.f32 %v2499_v16, %v2498_v22  ;;  %v2437_v56 = vpop.f32.mrb[106].mxu1  ;;  %v2501_v57 = vpop.f32.mrb[90].mxu0 }
 0x342   :  { %v2438_v58 = vpop.f32.mrb[107].mxu1  ;;  %v2502_v59 = vpop.f32.mrb[91].mxu0 }
 0x343   :  { %v3358_v60 = vadd.f32 %v2500_v55, %v2436_v54  ;;  %v2439_v61 = vadd.f32 %v2438_v58, %v2437_v56  ;;  %v2503_v62 = vadd.f32 %v2502_v59, %v2501_v57 }
 0x345   :  { %v3360_v63 = vadd.f32 %v2503_v62, %v2439_v61 }
 0x347   :  { %v2440_v1 = vpop.f32.mrb[108].mxu1  ;;  %v2504_v2 = vpop.f32.mrb[92].mxu0 }
 0x348   :  { %v2441_v4 = vpop.f32.mrb[109].mxu1  ;;  %v2505_v5 = vpop.f32.mrb[93].mxu0 }
 0x349   :  { %v2442_v6 = vadd.f32 %v2441_v4, %v2440_v1  ;;  %v2506_v7 = vadd.f32 %v2505_v5, %v2504_v2  ;;  %v2443_v8 = vpop.f32.mrb[110].mxu1  ;;  %v2507_v9 = vpop.f32.mrb[94].mxu0 }
 0x34a   :  { %v2444_v10 = vpop.f32.mrb[111].mxu1  ;;  %v2508_v11 = vpop.f32.mrb[95].mxu0 }
 0x34b   :  { %v3362_v12 = vadd.f32 %v2506_v7, %v2442_v6  ;;  %v2445_v13 = vadd.f32 %v2444_v10, %v2443_v8  ;;  %v2509_v15 = vadd.f32 %v2508_v11, %v2507_v9 }
 0x34d   :  { %v3364_v17 = vadd.f32 %v2509_v15, %v2445_v13 }
 0x34f   :  { %v2526_v23 = vpop.f32.mrb[112].mxu1  ;;  %v2590_v24 = vpop.f32.mrb[96].mxu0 }
 0x350   :  { %v2527_v25 = vpop.f32.mrb[113].mxu1  ;;  %v2591_v26 = vpop.f32.mrb[97].mxu0 }
 0x351   :  { %v2528_v28 = vadd.f32 %v2527_v25, %v2526_v23  ;;  %v2592_v29 = vadd.f32 %v2591_v26, %v2590_v24  ;;  %v2529_v30 = vpop.f32.mrb[114].mxu1  ;;  %v2593_v31 = vpop.f32.mrb[98].mxu0 }
 0x352   :  { %v2530_v34 = vpop.f32.mrb[115].mxu1  ;;  %v2594_v14 = vpop.f32.mrb[99].mxu0 }
 0x353   :  { %v1909_v36 = vadd.f32 %v2528_v28, %v3334_v43  ;;  %v2531_v38 = vadd.f32 %v2530_v34, %v2529_v30  ;;  %v2595_v19 = vadd.f32 %v2594_v14, %v2593_v31 }
 0x355   :  { %v2006_v37 = vadd.f32 %v2592_v29, %v1909_v36  ;;  %v1912_v42 = vadd.f32 %v2531_v38, %v3336_v33 }
 0x357   :  { %v2009_v20 = vadd.f32 %v2595_v19, %v1912_v42  ;;  %v2532_v41 = vpop.f32.mrb[116].mxu1  ;;  %v2596_v44 = vpop.f32.mrb[100].mxu0 }
 0x358   :  { %v2533_v45 = vpop.f32.mrb[117].mxu1  ;;  %v2597_v40 = vpop.f32.mrb[101].mxu0 }
 0x359   :  { %v2322_v46 = vpack.c.bf16 %v2009_v20, %v2006_v37  ;;  %v2534_v47 = vadd.f32 %v2533_v45, %v2532_v41  ;;  %v2598_v49 = vadd.f32 %v2597_v40, %v2596_v44  ;;  %v2535_v50 = vpop.f32.mrb[118].mxu1  ;;  %v2599_v51 = vpop.f32.mrb[102].mxu0 }
 0x35a   :  { %v2536_v22 = vpop.f32.mrb[119].mxu1  ;;  %v2600_v52 = vpop.f32.mrb[103].mxu0 }
 0x35b   :  { %2323 = vst [vmem:[#allocation12] sm:$0xff] %v2322_v46   ;;  %v1917_v43 = vadd.f32 %v2534_v47, %v3338_v32  ;;  %v2537_v16 = vadd.f32 %v2536_v22, %v2535_v50  ;;  %v2601_v54 = vadd.f32 %v2600_v52, %v2599_v51 }
 0x35d   :  { %v2014_v55 = vadd.f32 %v2598_v49, %v1917_v43  ;;  %v1920_v33 = vadd.f32 %v2537_v16, %v3340_v53 }
 0x35f   :  { %v2017_v56 = vadd.f32 %v2601_v54, %v1920_v33  ;;  %v2538_v57 = vpop.f32.mrb[120].mxu1  ;;  %v2602_v58 = vpop.f32.mrb[104].mxu0 }
 0x360   :  { %v2539_v59 = vpop.f32.mrb[121].mxu1  ;;  %v2603_v61 = vpop.f32.mrb[105].mxu0 }
 0x361   :  { %v2327_v62 = vpack.c.bf16 %v2017_v56, %v2014_v55  ;;  %v2540_v1 = vadd.f32 %v2539_v59, %v2538_v57  ;;  %v2604_v2 = vadd.f32 %v2603_v61, %v2602_v58  ;;  %v2541_v4 = vpop.f32.mrb[122].mxu1  ;;  %v2605_v5 = vpop.f32.mrb[106].mxu0 }
 0x362   :  { %v2542_v6 = vpop.f32.mrb[123].mxu1  ;;  %v2606_v7 = vpop.f32.mrb[107].mxu0 }
 0x363   :  { %2359 = vst [vmem:[#allocation12 + $0x8] sm:$0xff] %v2327_v62   ;;  %v1925_v32 = vadd.f32 %v2540_v1, %v3342_v0  ;;  %v2543_v8 = vadd.f32 %v2542_v6, %v2541_v4  ;;  %v2607_v9 = vadd.f32 %v2606_v7, %v2605_v5 }
 0x365   :  { %v2022_v10 = vadd.f32 %v2604_v2, %v1925_v32  ;;  %v1928_v53 = vadd.f32 %v2543_v8, %v3344_v3 }
 0x367   :  { %v2025_v11 = vadd.f32 %v2607_v9, %v1928_v53  ;;  %v2544_v13 = vpop.f32.mrb[124].mxu1  ;;  %v2608_v15 = vpop.f32.mrb[108].mxu0 }
 0x368   :  { %v2545_v23 = vpop.f32.mrb[125].mxu1  ;;  %v2609_v24 = vpop.f32.mrb[109].mxu0 }
 0x369   :  { %v2332_v25 = vpack.c.bf16 %v2025_v11, %v2022_v10  ;;  %v2546_v26 = vadd.f32 %v2545_v23, %v2544_v13  ;;  %v2610_v28 = vadd.f32 %v2609_v24, %v2608_v15  ;;  %v2547_v29 = vpop.f32.mrb[126].mxu1  ;;  %v2611_v30 = vpop.f32.mrb[110].mxu0 }
 0x36a   :  { %v2548_v31 = vpop.f32.mrb[127].mxu1  ;;  %v2612_v34 = vpop.f32.mrb[111].mxu0 }
 0x36b   :  { %2360 = vst [vmem:[#allocation12 + $0x10] sm:$0xff] %v2332_v25   ;;  %v1933_v0 = vadd.f32 %v2546_v26, %v3346_v27  ;;  %v2549_v14 = vadd.f32 %v2548_v31, %v2547_v29  ;;  %v2613_v36 = vadd.f32 %v2612_v34, %v2611_v30 }
 0x36d   :  { %v2030_v38 = vadd.f32 %v2610_v28, %v1933_v0  ;;  %v1936_v3 = vadd.f32 %v2549_v14, %v3348_v18 }
 0x36f   :  { %v2033_v19 = vadd.f32 %v2613_v36, %v1936_v3  ;;  %v2550_v37 = vpop.f32.mrb[128].mxu1 }
 0x370   :  { %v2551_v42 = vpop.f32.mrb[129].mxu1 }
 0x371   :  { %v2337_v20 = vpack.c.bf16 %v2033_v19, %v2030_v38  ;;  %v2552_v41 = vadd.f32 %v2551_v42, %v2550_v37  ;;  %v2553_v44 = vpop.f32.mrb[130].mxu1 }
 0x372   :  { %v2554_v45 = vpop.f32.mrb[131].mxu1 }
 0x373   :  { %2361 = vst [vmem:[#allocation12 + $0x18] sm:$0xff] %v2337_v20   ;;  %v1941_v40 = vadd.f32 %v2552_v41, %v3350_v35  ;;  %v2555_v46 = vadd.f32 %v2554_v45, %v2553_v44 }
 0x375   :  { %v1944_v47 = vadd.f32 %v2555_v46, %v3352_v39 }
 0x377   :  { %v2556_v49 = vpop.f32.mrb[132].mxu1 }
 0x378   :  { %v2557_v27 = vpop.f32.mrb[133].mxu1 }
 0x379   :  { %v2558_v50 = vadd.f32 %v2557_v27, %v2556_v49  ;;  %v2559_v51 = vpop.f32.mrb[134].mxu1 }
 0x37a   :  { %v2560_v22 = vpop.f32.mrb[135].mxu1 }
 0x37b   :  { %v1949_v18 = vadd.f32 %v2558_v50, %v3354_v48  ;;  %v2561_v52 = vadd.f32 %v2560_v22, %v2559_v51 }
 0x37d   :  { %v1952_v43 = vadd.f32 %v2561_v52, %v3356_v21 }
 0x37f   :  { %v2562_v16 = vpop.f32.mrb[136].mxu1 }
 0x380   :  { %v2563_v54 = vpop.f32.mrb[137].mxu1 }
 0x381   :  { %v2564_v55 = vadd.f32 %v2563_v54, %v2562_v16  ;;  %v2565_v33 = vpop.f32.mrb[138].mxu1 }
 0x382   :  { %v2566_v56 = vpop.f32.mrb[139].mxu1 }
 0x383   :  { %v1957_v35 = vadd.f32 %v2564_v55, %v3358_v60  ;;  %v2567_v57 = vadd.f32 %v2566_v56, %v2565_v33 }
 0x385   :  { %v1960_v39 = vadd.f32 %v2567_v57, %v3360_v63 }
 0x387   :  { %v2568_v58 = vpop.f32.mrb[140].mxu1 }
 0x388   :  { %v2569_v59 = vpop.f32.mrb[141].mxu1 }
 0x389   :  { %v2570_v61 = vadd.f32 %v2569_v59, %v2568_v58  ;;  %v2571_v62 = vpop.f32.mrb[142].mxu1 }
 0x38a   :  { %v2572_v1 = vpop.f32.mrb[143].mxu1 }
 0x38b   :  { %v1965_v48 = vadd.f32 %v2570_v61, %v3362_v12  ;;  %v2573_v2 = vadd.f32 %v2572_v1, %v2571_v62 }
 0x38d   :  { %v1968_v21 = vadd.f32 %v2573_v2, %v3364_v17 }
 0x38f   :  { %v2614_v4 = vpop.f32.mrb[112].mxu0 }
 0x390   :  { %v2615_v5 = vpop.f32.mrb[113].mxu0 }
 0x391   :  { %v2616_v6 = vadd.f32 %v2615_v5, %v2614_v4  ;;  %v2617_v7 = vpop.f32.mrb[114].mxu0 }
 0x392   :  { %v2618_v32 = vpop.f32.mrb[115].mxu0 }
 0x393   :  { %v2038_v8 = vadd.f32 %v2616_v6, %v1941_v40  ;;  %v2619_v60 = vadd.f32 %v2618_v32, %v2617_v7 }
 0x395   :  { %v2041_v9 = vadd.f32 %v2619_v60, %v1944_v47 }
 0x397   :  { %v2342_v10 = vpack.c.bf16 %v2041_v9, %v2038_v8  ;;  %v2620_v63 = vpop.f32.mrb[116].mxu0 }
 0x398   :  { %v2621_v53 = vpop.f32.mrb[117].mxu0 }
 0x399   :  { %2362 = vst [vmem:[#allocation12 + $0x20] sm:$0xff] %v2342_v10   ;;  %v2622_v11 = vadd.f32 %v2621_v53, %v2620_v63  ;;  %v2623_v13 = vpop.f32.mrb[118].mxu0 }
 0x39a   :  { %v2624_v15 = vpop.f32.mrb[119].mxu0 }
 0x39b   :  { %v2046_v23 = vadd.f32 %v2622_v11, %v1949_v18  ;;  %v2625_v12 = vadd.f32 %v2624_v15, %v2623_v13 }
 0x39d   :  { %v2049_v24 = vadd.f32 %v2625_v12, %v1952_v43 }
 0x39f   :  { %v2347_v25 = vpack.c.bf16 %v2049_v24, %v2046_v23  ;;  %v2626_v17 = vpop.f32.mrb[120].mxu0 }
 0x3a0   :  { %v2627_v26 = vpop.f32.mrb[121].mxu0 }
 0x3a1   :  { %2363 = vst [vmem:[#allocation12 + $0x28] sm:$0xff] %v2347_v25   ;;  %v2628_v28 = vadd.f32 %v2627_v26, %v2626_v17  ;;  %v2629_v29 = vpop.f32.mrb[122].mxu0 }
 0x3a2   :  { %v2630_v30 = vpop.f32.mrb[123].mxu0 }
 0x3a3   :  { %v2054_v31 = vadd.f32 %v2628_v28, %v1957_v35  ;;  %v2631_v34 = vadd.f32 %v2630_v30, %v2629_v29 }
 0x3a5   :  { %v2057_v0 = vadd.f32 %v2631_v34, %v1960_v39 }
 0x3a7   :  { %v2352_v14 = vpack.c.bf16 %v2057_v0, %v2054_v31  ;;  %v2632_v36 = vpop.f32.mrb[124].mxu0 }
 0x3a8   :  { %v2633_v38 = vpop.f32.mrb[125].mxu0 }
 0x3a9   :  { %2364 = vst [vmem:[#allocation12 + $0x30] sm:$0xff] %v2352_v14   ;;  %v2634_v3 = vadd.f32 %v2633_v38, %v2632_v36  ;;  %v2635_v19 = vpop.f32.mrb[126].mxu0 }
 0x3aa   :  { %v2636_v37 = vpop.f32.mrb[127].mxu0 }
 0x3ab   :  { %v2062_v42 = vadd.f32 %v2634_v3, %v1965_v48  ;;  %v2637_v20 = vadd.f32 %v2636_v37, %v2635_v19 }
 0x3ad   :  { %v2065_v41 = vadd.f32 %v2637_v20, %v1968_v21 }
 0x3af   :  { %v2357_v44 = vpack.c.bf16 %v2065_v41, %v2062_v42 }
 0x3b1   :  { %2365 = vst [vmem:[#allocation12 + $0x38] sm:$0xff] %v2357_v44  }
 0x3b2   :  { %2885 = shalt.err (!%p2882_p2)
}
 0x3b3   :  { %s2886_s9 = scalar_lea.hbm %s3402_s5, 1024 }
 0x3b4   :  { %p2887_p3 = scmp.ne.s32.totalorder %s3402_s5, %s2886_s9  ;;  %p2890_p4 = scmp.lt.u32.totalorder %s2886_s9, %s3402_s5 }
 0x3b6   :  { %p2892_p5 = pnand %p2890_p4, %p2887_p3 }
 0x3b8   :  { %2895 = shalt.err (!%p2892_p5)
}
 0x3b9   :  { %2159 = dma.vmem_to_hbm [thread:$0]  %s2154_s3, 1024, %s3402_s5, [#allocation5], %s2906_s30, %s2906_s30, %s2907_s6  }
 0x3ba   :  { %2902 = dma.done.wait [#allocation5], 1024  }
 0x3bb   :  { %2903 = vsyncadd [#allocation5], 4294966272 }
 0x3bc   :  { %2163 = vsyncpa [#allocation4], 1 }
 0x3bd   :  { %2164 = vsyncpa [#allocation7], 1 }
 0x3be   :  { %2165 = vsyncpa [#allocation10], 1 }
 0x3bf   :  { %2166 = vsyncpa [#allocation5], 1 }

</bundles_post_ra>
